<compile_context>
chip_gen: v6e
topology: v6e:2x2x1
jax: 0.10.0
libtpu: 0.0.40
codegen_flags: <defaults>
</compile_context>

<pallas_src>
import functools
import math

import jax
import jax.numpy as jnp
from jax import lax
from jax.experimental import pallas as pl
from jax.experimental.pallas import tpu as pltpu

_C_PAD = 8      # pad flow channels to a full sublane tile
_LANE = 128     # flattened spatial axis padded to a multiple of the lane width


# ---------------- Pallas kernel ----------------

def _vecint_kernel(vec_ref, base_ref, out_ref, *, spatial, strides, nsteps, scale):
    """vec_ref/out_ref block: (1, _C_PAD, S_pad); base_ref: (_C_PAD, S_pad)."""
    ndims = len(spatial)
    s_pad = out_ref.shape[-1]

    base = base_ref[...]                                     # (_C_PAD, S_pad)
    # q (source flat position) runs along the sublane axis of A^T.
    row_q = lax.broadcasted_iota(jnp.int32, (s_pad, s_pad), 0)

    # v <- vec * 1/2**nsteps ; keep the running field in the VMEM output block.
    out_ref[0] = vec_ref[0] * scale

    def step(_, carry):
        v = out_ref[0]                                       # (_C_PAD, S_pad)

        # Absolute sampling coordinate per spatial dim: identity grid + flow.
        lo, frac = [], []
        for d in range(ndims):
            coord = base[d:d + 1, :] + v[d:d + 1, :]         # (1, S_pad)
            f = jnp.floor(coord)
            lo.append(f.astype(jnp.int32))
            frac.append(coord - f)

        # A^T[q, p] = interpolation weight of source voxel q for output voxel p.
        # TODO(synk): the dense (S_pad, S_pad) one-hot matrix only scales to
        # small fields; large fields need a tiled DMA-gather warp kernel.
        a_t = jnp.zeros((s_pad, s_pad), jnp.float32)
        for bits in range(2 ** ndims):                       # interpolation corners
            w = None
            flat = None
            inb = None
            for d in range(ndims):
                hi = (bits >> d) & 1
                idx = lo[d] + hi                             # (1, S_pad) int32
                wd = frac[d] if hi else (1.0 - frac[d])
                w = wd if w is None else w * wd
                ok = (idx >= 0) & (idx < spatial[d])
                inb = ok if inb is None else (inb & ok)
                fl = idx * strides[d]
                flat = fl if flat is None else flat + fl
            w = jnp.where(inb, w, 0.0)                       # zeros padding (OOB)
            a_t = a_t + jnp.where(row_q == flat, w, 0.0)     # (S_pad, S_pad)

        # warped[c, p] = sum_q v[c, q] * A^T[q, p]   (lane-dense MXU matmul)
        warped = jnp.dot(v, a_t, preferred_element_type=jnp.float32)
        out_ref[0] = v + warped
        return carry

    lax.fori_loop(0, nsteps, step, 0)


# ---------------- wrapper ----------------

def vecint_forward(vec, nsteps):
    """vec: (N, ndims, *spatial) stationary velocity field.  Returns same shape."""
    assert nsteps >= 0
    N, ndims = vec.shape[0], vec.shape[1]
    spatial = tuple(int(s) for s in vec.shape[2:])
    assert len(spatial) == ndims, "flow must have one channel per spatial dim"
    assert ndims <= _C_PAD

    S = math.prod(spatial)
    s_pad = ((S + _LANE - 1) // _LANE) * _LANE
    scale = 1.0 / (2 ** nsteps)

    # Row-major strides of the flattened spatial index.
    strides, acc = [], 1
    for s in reversed(spatial):
        strides.append(acc)
        acc *= s
    strides = tuple(reversed(strides))

    # (N, ndims, S) -> pad channels to 8 sublanes, lanes to a multiple of 128.
    v_flat = vec.reshape(N, ndims, S).astype(jnp.float32)
    v_in = jnp.zeros((N, _C_PAD, s_pad), jnp.float32).at[:, :ndims, :S].set(v_flat)

    # Identity grid, one row per spatial dim; padded lane positions are pushed
    # far out of bounds so they neither contribute to nor receive anything.
    grids = jnp.meshgrid(*[jnp.arange(s, dtype=jnp.float32) for s in spatial],
                         indexing="ij")
    base = jnp.stack([g.reshape(S) for g in grids], axis=0)          # (ndims, S)
    base_in = jnp.full((_C_PAD, s_pad), -1e6, jnp.float32).at[:ndims, :S].set(base)

    kernel = functools.partial(
        _vecint_kernel, spatial=spatial, strides=strides,
        nsteps=int(nsteps), scale=scale)

    out = pl.pallas_call(
        kernel,
        out_shape=jax.ShapeDtypeStruct((N, _C_PAD, s_pad), jnp.float32),
        grid_spec=pltpu.PrefetchScalarGridSpec(
            num_scalar_prefetch=0,
            grid=(N,),
            in_specs=[
                pl.BlockSpec((1, _C_PAD, s_pad), lambda n: (n, 0, 0)),
                pl.BlockSpec((_C_PAD, s_pad), lambda n: (0, 0)),
            ],
            out_specs=pl.BlockSpec((1, _C_PAD, s_pad), lambda n: (n, 0, 0)),
        ),
        compiler_params=pltpu.CompilerParams(
            dimension_semantics=("parallel",)),
    )(v_in, base_in)

    return out[:, :ndims, :S].reshape(vec.shape)


# ---------------- reference (pure JAX / XLA) ----------------

def vecint_reference(vec, nsteps):
    N, ndims = vec.shape[0], vec.shape[1]
    spatial = tuple(int(s) for s in vec.shape[2:])
    S = math.prod(spatial)
    strides, acc = [], 1
    for s in reversed(spatial):
        strides.append(acc)
        acc *= s
    strides = tuple(reversed(strides))

    grids = jnp.meshgrid(*[jnp.arange(s, dtype=jnp.float32) for s in spatial],
                         indexing="ij")
    base = jnp.stack(grids, axis=0)                          # (ndims, *spatial)

    def warp(v):
        coords = base[None] + v                              # (N, ndims, *spatial)
        lo_f = jnp.floor(coords)
        frac = coords - lo_f
        lo = lo_f.astype(jnp.int32)
        src = v.reshape(N, ndims, S)
        out = jnp.zeros_like(v)
        for bits in range(2 ** ndims):
            w = jnp.ones((N,) + spatial, jnp.float32)
            flat = jnp.zeros((N,) + spatial, jnp.int32)
            inb = jnp.ones((N,) + spatial, bool)
            for d in range(ndims):
                hi = (bits >> d) & 1
                idx = lo[:, d] + hi
                w = w * (frac[:, d] if hi else (1.0 - frac[:, d]))
                inb = inb & (idx >= 0) & (idx < spatial[d])
                flat = flat + jnp.clip(idx, 0, spatial[d] - 1) * strides[d]
            w = jnp.where(inb, w, 0.0)
            g = jnp.take_along_axis(
                src, jnp.broadcast_to(flat.reshape(N, 1, S), (N, ndims, S)), axis=2)
            out = out + w[:, None] * g.reshape(v.shape)
        return out

    v = vec.astype(jnp.float32) * (1.0 / 2 ** nsteps)
    for _ in range(nsteps):
        v = v + warp(v)
    return v


if __name__ == "__main__":
    N, H, W = 2, 16, 16        # 2-D field: (N, ndims=2, H, W)
    nsteps = 7                 # canonical VecInt setting

    key = jax.random.PRNGKey(0)
    vec = jax.random.normal(key, (N, 2, H, W), jnp.float32)

    out = jax.block_until_ready(vecint_forward(vec, nsteps))
    assert out.shape == vec.shape, out.shape

    ref = jax.block_until_ready(vecint_reference(vec, nsteps))
    max_err = float(jnp.max(jnp.abs(out - ref)))
    assert max_err < 5e-2, f"mismatch vs reference: {max_err}"

    print("KERNEL_OK")
</pallas_src>

<mosaic_0001>
module attributes {stable_mosaic.version = 11 : i64} {
  func.func @_vecint_kernel(%arg0: i32, %arg1: memref<1x8x256xf32, #tpu.memory_space<vmem>>, %arg2: memref<8x256xf32, #tpu.memory_space<vmem>>, %arg3: memref<1x8x256xf32, #tpu.memory_space<vmem>>) attributes {dimension_semantics = [#tpu.dimension_semantics<parallel>], iteration_bounds = array<i64: 2>, scalar_prefetch = 0 : i64, scratch_operands = 0 : i64, tpu.core_type = #tpu.core_type<tc>, window_params = [{transform_indices = @transform_0, window_bounds = array<i64: 1, 8, 256>}, {pipeline_mode = #tpu.pipeline_mode<synchronous>, transform_indices = @transform_1, window_bounds = array<i64: 8, 256>}, {transform_indices = @transform_2, window_bounds = array<i64: 1, 8, 256>}]} {
    %c0 = arith.constant 0 : index
    %c0_0 = arith.constant 0 : index
    %0 = vector.load %arg2[%c0, %c0_0] : memref<8x256xf32, #tpu.memory_space<vmem>>, vector<8x256xf32>
    %1 = tpu.iota {dimensions = array<i32: 0>} : vector<256x256xi32>
    %c0_1 = arith.constant 0 : index
    %c0_2 = arith.constant 0 : index
    %c0_3 = arith.constant 0 : index
    %2 = vector.load %arg1[%c0_1, %c0_2, %c0_3] : memref<1x8x256xf32, #tpu.memory_space<vmem>>, vector<1x8x256xf32>
    %3 = vector.shape_cast %2 : vector<1x8x256xf32> to vector<8x256xf32>
    %cst = arith.constant 7.812500e-03 : f32
    %4 = vector.broadcast %cst : f32 to vector<8x256xf32>
    %5 = arith.mulf %3, %4 : vector<8x256xf32>
    %c0_4 = arith.constant 0 : index
    %c0_5 = arith.constant 0 : index
    %c0_6 = arith.constant 0 : index
    %6 = vector.load %arg3[%c0_4, %c0_5, %c0_6] : memref<1x8x256xf32, #tpu.memory_space<vmem>>, vector<1x8x256xf32>
    %7 = vector.shape_cast %6 : vector<1x8x256xf32> to vector<8x256xf32>
    %8 = vector.shape_cast %5 : vector<8x256xf32> to vector<1x8x256xf32>
    tpu.vector_store %arg3[%c0_4, %c0_5, %c0_6], %8 {strides = array<i32>} : memref<1x8x256xf32, #tpu.memory_space<vmem>>, vector<1x8x256xf32>,
    %c0_i32 = arith.constant 0 : i32
    %c7_i32 = arith.constant 7 : i32
    %9 = arith.addi %c0_i32, %c7_i32 : i32
    %c1_i32 = arith.constant 1 : i32
    scf.for %arg4 = %c0_i32 to %9 step %c1_i32  : i32 {
      %c0_7 = arith.constant 0 : index
      %c0_8 = arith.constant 0 : index
      %c0_9 = arith.constant 0 : index
      %10 = vector.load %arg3[%c0_7, %c0_8, %c0_9] : memref<1x8x256xf32, #tpu.memory_space<vmem>>, vector<1x8x256xf32>
      %11 = vector.shape_cast %10 : vector<1x8x256xf32> to vector<8x256xf32>
      %12 = vector.extract_strided_slice %0 {offsets = [0, 0], sizes = [1, 256], strides = [1, 1]} : vector<8x256xf32> to vector<1x256xf32>
      %13 = vector.extract_strided_slice %11 {offsets = [0, 0], sizes = [1, 256], strides = [1, 1]} : vector<8x256xf32> to vector<1x256xf32>
      %14 = arith.addf %12, %13 : vector<1x256xf32>
      %15 = math.floor %14 : vector<1x256xf32>
      %16 = arith.fptosi %15 : vector<1x256xf32> to vector<1x256xi32>
      %17 = arith.subf %14, %15 : vector<1x256xf32>
      %18 = vector.extract_strided_slice %0 {offsets = [1, 0], sizes = [1, 256], strides = [1, 1]} : vector<8x256xf32> to vector<1x256xf32>
      %19 = vector.extract_strided_slice %11 {offsets = [1, 0], sizes = [1, 256], strides = [1, 1]} : vector<8x256xf32> to vector<1x256xf32>
      %20 = arith.addf %18, %19 : vector<1x256xf32>
      %21 = math.floor %20 : vector<1x256xf32>
      %22 = arith.fptosi %21 : vector<1x256xf32> to vector<1x256xi32>
      %23 = arith.subf %20, %21 : vector<1x256xf32>
      %cst_10 = arith.constant 0.000000e+00 : f32
      %24 = vector.broadcast %cst_10 : f32 to vector<256x256xf32>
      %c0_i32_11 = arith.constant 0 : i32
      %25 = vector.broadcast %c0_i32_11 : i32 to vector<1x256xi32>
      %26 = arith.addi %16, %25 : vector<1x256xi32>
      %cst_12 = arith.constant 1.000000e+00 : f32
      %27 = vector.broadcast %cst_12 : f32 to vector<1x256xf32>
      %28 = arith.subf %27, %17 : vector<1x256xf32>
      %c0_i32_13 = arith.constant 0 : i32
      %29 = vector.broadcast %c0_i32_13 : i32 to vector<1x256xi32>
      %30 = arith.cmpi sge, %26, %29 : vector<1x256xi32>
      %c16_i32 = arith.constant 16 : i32
      %31 = vector.broadcast %c16_i32 : i32 to vector<1x256xi32>
      %32 = arith.cmpi slt, %26, %31 : vector<1x256xi32>
      %33 = arith.andi %30, %32 : vector<1x256xi1>
      %c16_i32_14 = arith.constant 16 : i32
      %34 = vector.broadcast %c16_i32_14 : i32 to vector<1x256xi32>
      %35 = arith.muli %26, %34 : vector<1x256xi32>
      %c0_i32_15 = arith.constant 0 : i32
      %36 = vector.broadcast %c0_i32_15 : i32 to vector<1x256xi32>
      %37 = arith.addi %22, %36 : vector<1x256xi32>
      %cst_16 = arith.constant 1.000000e+00 : f32
      %38 = vector.broadcast %cst_16 : f32 to vector<1x256xf32>
      %39 = arith.subf %38, %23 : vector<1x256xf32>
      %40 = arith.mulf %28, %39 : vector<1x256xf32>
      %c0_i32_17 = arith.constant 0 : i32
      %41 = vector.broadcast %c0_i32_17 : i32 to vector<1x256xi32>
      %42 = arith.cmpi sge, %37, %41 : vector<1x256xi32>
      %c16_i32_18 = arith.constant 16 : i32
      %43 = vector.broadcast %c16_i32_18 : i32 to vector<1x256xi32>
      %44 = arith.cmpi slt, %37, %43 : vector<1x256xi32>
      %45 = arith.andi %42, %44 : vector<1x256xi1>
      %46 = arith.andi %33, %45 : vector<1x256xi1>
      %c1_i32_19 = arith.constant 1 : i32
      %47 = vector.broadcast %c1_i32_19 : i32 to vector<1x256xi32>
      %48 = arith.muli %37, %47 : vector<1x256xi32>
      %49 = arith.addi %35, %48 : vector<1x256xi32>
      %cst_20 = arith.constant 0.000000e+00 : f32
      %50 = vector.broadcast %cst_20 : f32 to vector<1x256xf32>
      %51 = arith.select %46, %40, %50 : vector<1x256xi1>, vector<1x256xf32>
      %52 = vector.broadcast %49 : vector<1x256xi32> to vector<256x256xi32>
      %53 = arith.cmpi eq, %1, %52 : vector<256x256xi32>
      %cst_21 = arith.constant 0.000000e+00 : f32
      %54 = vector.shape_cast %51 : vector<1x256xf32> to vector<1x256xf32>
      %55 = vector.broadcast %54 : vector<1x256xf32> to vector<256x256xf32>
      %56 = vector.broadcast %cst_21 : f32 to vector<256x256xf32>
      %57 = arith.select %53, %55, %56 : vector<256x256xi1>, vector<256x256xf32>
      %58 = arith.addf %24, %57 : vector<256x256xf32>
      %c1_i32_22 = arith.constant 1 : i32
      %59 = vector.broadcast %c1_i32_22 : i32 to vector<1x256xi32>
      %60 = arith.addi %16, %59 : vector<1x256xi32>
      %c0_i32_23 = arith.constant 0 : i32
      %61 = vector.broadcast %c0_i32_23 : i32 to vector<1x256xi32>
      %62 = arith.cmpi sge, %60, %61 : vector<1x256xi32>
      %c16_i32_24 = arith.constant 16 : i32
      %63 = vector.broadcast %c16_i32_24 : i32 to vector<1x256xi32>
      %64 = arith.cmpi slt, %60, %63 : vector<1x256xi32>
      %65 = arith.andi %62, %64 : vector<1x256xi1>
      %c16_i32_25 = arith.constant 16 : i32
      %66 = vector.broadcast %c16_i32_25 : i32 to vector<1x256xi32>
      %67 = arith.muli %60, %66 : vector<1x256xi32>
      %c0_i32_26 = arith.constant 0 : i32
      %68 = vector.broadcast %c0_i32_26 : i32 to vector<1x256xi32>
      %69 = arith.addi %22, %68 : vector<1x256xi32>
      %cst_27 = arith.constant 1.000000e+00 : f32
      %70 = vector.broadcast %cst_27 : f32 to vector<1x256xf32>
      %71 = arith.subf %70, %23 : vector<1x256xf32>
      %72 = arith.mulf %17, %71 : vector<1x256xf32>
      %c0_i32_28 = arith.constant 0 : i32
      %73 = vector.broadcast %c0_i32_28 : i32 to vector<1x256xi32>
      %74 = arith.cmpi sge, %69, %73 : vector<1x256xi32>
      %c16_i32_29 = arith.constant 16 : i32
      %75 = vector.broadcast %c16_i32_29 : i32 to vector<1x256xi32>
      %76 = arith.cmpi slt, %69, %75 : vector<1x256xi32>
      %77 = arith.andi %74, %76 : vector<1x256xi1>
      %78 = arith.andi %65, %77 : vector<1x256xi1>
      %c1_i32_30 = arith.constant 1 : i32
      %79 = vector.broadcast %c1_i32_30 : i32 to vector<1x256xi32>
      %80 = arith.muli %69, %79 : vector<1x256xi32>
      %81 = arith.addi %67, %80 : vector<1x256xi32>
      %cst_31 = arith.constant 0.000000e+00 : f32
      %82 = vector.broadcast %cst_31 : f32 to vector<1x256xf32>
      %83 = arith.select %78, %72, %82 : vector<1x256xi1>, vector<1x256xf32>
      %84 = vector.broadcast %81 : vector<1x256xi32> to vector<256x256xi32>
      %85 = arith.cmpi eq, %1, %84 : vector<256x256xi32>
      %cst_32 = arith.constant 0.000000e+00 : f32
      %86 = vector.shape_cast %83 : vector<1x256xf32> to vector<1x256xf32>
      %87 = vector.broadcast %86 : vector<1x256xf32> to vector<256x256xf32>
      %88 = vector.broadcast %cst_32 : f32 to vector<256x256xf32>
      %89 = arith.select %85, %87, %88 : vector<256x256xi1>, vector<256x256xf32>
      %90 = arith.addf %58, %89 : vector<256x256xf32>
      %c0_i32_33 = arith.constant 0 : i32
      %91 = vector.broadcast %c0_i32_33 : i32 to vector<1x256xi32>
      %92 = arith.addi %16, %91 : vector<1x256xi32>
      %cst_34 = arith.constant 1.000000e+00 : f32
      %93 = vector.broadcast %cst_34 : f32 to vector<1x256xf32>
      %94 = arith.subf %93, %17 : vector<1x256xf32>
      %c0_i32_35 = arith.constant 0 : i32
      %95 = vector.broadcast %c0_i32_35 : i32 to vector<1x256xi32>
      %96 = arith.cmpi sge, %92, %95 : vector<1x256xi32>
      %c16_i32_36 = arith.constant 16 : i32
      %97 = vector.broadcast %c16_i32_36 : i32 to vector<1x256xi32>
      %98 = arith.cmpi slt, %92, %97 : vector<1x256xi32>
      %99 = arith.andi %96, %98 : vector<1x256xi1>
      %c16_i32_37 = arith.constant 16 : i32
      %100 = vector.broadcast %c16_i32_37 : i32 to vector<1x256xi32>
      %101 = arith.muli %92, %100 : vector<1x256xi32>
      %c1_i32_38 = arith.constant 1 : i32
      %102 = vector.broadcast %c1_i32_38 : i32 to vector<1x256xi32>
      %103 = arith.addi %22, %102 : vector<1x256xi32>
      %104 = arith.mulf %94, %23 : vector<1x256xf32>
      %c0_i32_39 = arith.constant 0 : i32
      %105 = vector.broadcast %c0_i32_39 : i32 to vector<1x256xi32>
      %106 = arith.cmpi sge, %103, %105 : vector<1x256xi32>
      %c16_i32_40 = arith.constant 16 : i32
      %107 = vector.broadcast %c16_i32_40 : i32 to vector<1x256xi32>
      %108 = arith.cmpi slt, %103, %107 : vector<1x256xi32>
      %109 = arith.andi %106, %108 : vector<1x256xi1>
      %110 = arith.andi %99, %109 : vector<1x256xi1>
      %c1_i32_41 = arith.constant 1 : i32
      %111 = vector.broadcast %c1_i32_41 : i32 to vector<1x256xi32>
      %112 = arith.muli %103, %111 : vector<1x256xi32>
      %113 = arith.addi %101, %112 : vector<1x256xi32>
      %cst_42 = arith.constant 0.000000e+00 : f32
      %114 = vector.broadcast %cst_42 : f32 to vector<1x256xf32>
      %115 = arith.select %110, %104, %114 : vector<1x256xi1>, vector<1x256xf32>
      %116 = vector.broadcast %113 : vector<1x256xi32> to vector<256x256xi32>
      %117 = arith.cmpi eq, %1, %116 : vector<256x256xi32>
      %cst_43 = arith.constant 0.000000e+00 : f32
      %118 = vector.shape_cast %115 : vector<1x256xf32> to vector<1x256xf32>
      %119 = vector.broadcast %118 : vector<1x256xf32> to vector<256x256xf32>
      %120 = vector.broadcast %cst_43 : f32 to vector<256x256xf32>
      %121 = arith.select %117, %119, %120 : vector<256x256xi1>, vector<256x256xf32>
      %122 = arith.addf %90, %121 : vector<256x256xf32>
      %c1_i32_44 = arith.constant 1 : i32
      %123 = vector.broadcast %c1_i32_44 : i32 to vector<1x256xi32>
      %124 = arith.addi %16, %123 : vector<1x256xi32>
      %c0_i32_45 = arith.constant 0 : i32
      %125 = vector.broadcast %c0_i32_45 : i32 to vector<1x256xi32>
      %126 = arith.cmpi sge, %124, %125 : vector<1x256xi32>
      %c16_i32_46 = arith.constant 16 : i32
      %127 = vector.broadcast %c16_i32_46 : i32 to vector<1x256xi32>
      %128 = arith.cmpi slt, %124, %127 : vector<1x256xi32>
      %129 = arith.andi %126, %128 : vector<1x256xi1>
      %c16_i32_47 = arith.constant 16 : i32
      %130 = vector.broadcast %c16_i32_47 : i32 to vector<1x256xi32>
      %131 = arith.muli %124, %130 : vector<1x256xi32>
      %c1_i32_48 = arith.constant 1 : i32
      %132 = vector.broadcast %c1_i32_48 : i32 to vector<1x256xi32>
      %133 = arith.addi %22, %132 : vector<1x256xi32>
      %134 = arith.mulf %17, %23 : vector<1x256xf32>
      %c0_i32_49 = arith.constant 0 : i32
      %135 = vector.broadcast %c0_i32_49 : i32 to vector<1x256xi32>
      %136 = arith.cmpi sge, %133, %135 : vector<1x256xi32>
      %c16_i32_50 = arith.constant 16 : i32
      %137 = vector.broadcast %c16_i32_50 : i32 to vector<1x256xi32>
      %138 = arith.cmpi slt, %133, %137 : vector<1x256xi32>
      %139 = arith.andi %136, %138 : vector<1x256xi1>
      %140 = arith.andi %129, %139 : vector<1x256xi1>
      %c1_i32_51 = arith.constant 1 : i32
      %141 = vector.broadcast %c1_i32_51 : i32 to vector<1x256xi32>
      %142 = arith.muli %133, %141 : vector<1x256xi32>
      %143 = arith.addi %131, %142 : vector<1x256xi32>
      %cst_52 = arith.constant 0.000000e+00 : f32
      %144 = vector.broadcast %cst_52 : f32 to vector<1x256xf32>
      %145 = arith.select %140, %134, %144 : vector<1x256xi1>, vector<1x256xf32>
      %146 = vector.broadcast %143 : vector<1x256xi32> to vector<256x256xi32>
      %147 = arith.cmpi eq, %1, %146 : vector<256x256xi32>
      %cst_53 = arith.constant 0.000000e+00 : f32
      %148 = vector.shape_cast %145 : vector<1x256xf32> to vector<1x256xf32>
      %149 = vector.broadcast %148 : vector<1x256xf32> to vector<256x256xf32>
      %150 = vector.broadcast %cst_53 : f32 to vector<256x256xf32>
      %151 = arith.select %147, %149, %150 : vector<256x256xi1>, vector<256x256xf32>
      %152 = arith.addf %122, %151 : vector<256x256xf32>
      %cst_54 = arith.constant dense<0.000000e+00> : vector<8x256xf32>
      %153 = tpu.matmul %11, %152, %cst_54 {dimension_numbers = #tpu.dot_dimension_numbers<[1], [0], [0], [1], [0, 0, 1, 1], [], []>} : vector<8x256xf32>, vector<256x256xf32>, vector<8x256xf32> -> vector<8x256xf32>
      %154 = arith.addf %11, %153 : vector<8x256xf32>
      %c0_55 = arith.constant 0 : index
      %c0_56 = arith.constant 0 : index
      %c0_57 = arith.constant 0 : index
      %155 = vector.load %arg3[%c0_55, %c0_56, %c0_57] : memref<1x8x256xf32, #tpu.memory_space<vmem>>, vector<1x8x256xf32>
      %156 = vector.shape_cast %155 : vector<1x8x256xf32> to vector<8x256xf32>
      %157 = vector.shape_cast %154 : vector<8x256xf32> to vector<1x8x256xf32>
      tpu.vector_store %arg3[%c0_55, %c0_56, %c0_57], %157 {strides = array<i32>} : memref<1x8x256xf32, #tpu.memory_space<vmem>>, vector<1x8x256xf32>,
    }
    return
  }
  func.func @transform_0(%arg0: i32) -> (i32, i32, i32) {
    %c0_i32 = arith.constant 0 : i32
    %c0_i32_0 = arith.constant 0 : i32
    %c0_i32_1 = arith.constant 0 : i32
    return %arg0, %c0_i32, %c0_i32_0 : i32, i32, i32
  }
  func.func @transform_1(%arg0: i32) -> (i32, i32) {
    %c0_i32 = arith.constant 0 : i32
    %c0_i32_0 = arith.constant 0 : i32
    %c0_i32_1 = arith.constant 0 : i32
    return %c0_i32, %c0_i32_0 : i32, i32
  }
  func.func @transform_2(%arg0: i32) -> (i32, i32, i32) {
    %c0_i32 = arith.constant 0 : i32
    %c0_i32_0 = arith.constant 0 : i32
    %c0_i32_1 = arith.constant 0 : i32
    return %arg0, %c0_i32, %c0_i32_0 : i32, i32, i32
  }
}

</mosaic_0001>

<bundles_post_ra>
// kernel: tpu_custom_call.1
= control target key start
LH: loop header
LB: loop body
LE: loop exit
PB: predicated region body
PF: predicated region fallthrough
CT: control target
= control target key end

     0   :  { %7 = vsyncpa [#allocation3], 0  ;;  %s2765_s0 = inlined_call_operand.hbm [shape: f32[2,8,256], index: 0, kind: input, shape index: {}]   ;;  %s2766_s1 = inlined_call_operand.hbm [shape: f32[8,256], index: 1, kind: input, shape index: {}]   ;;  %s2767_s2 = inlined_call_operand.hbm [shape: f32[2,8,256], index: 2, kind: output, shape index: {}]  }
   0x1   :  { %9 = vsyncpa [#allocation3 + $0x1], 0 }
   0x2   :  { %10 = vsyncpa [#allocation6], 0 }
   0x3   :  { %11 = vsyncpa [#allocation4], 0 }
   0x4   :  { %13 = vsyncpa [#allocation4 + $0x1], 0  ;;  %s1558_s9 = smov 0   ;;  %s1560_s10 = smov 0  }
   0x5   :  { %s1562_s11 = smov 0   ;;  %s1564_s12 = smov 0  }
   0x6 LB: > { %s1579_s13 = sadd.s32 4294967295, %s1533_s12   ;;  %s1317_s14 = sadd.s32 4294967294, %s1533_s12   ;;  %s1533_s12 = sphi %s1564_s12, %s2815_s12   ;;  %s1529_s11 = sphi %s1562_s11, %s2814_s11   ;;  %s1525_s10 = sphi %s1560_s10, %s2813_s10   ;;  %s1521_s9 = sphi %s1558_s9, %s2812_s9  }
   0x7   : > { %p39_p0 = scmp.ne.s32.totalorder %s1525_s10, %s1521_s9  ;;  %p2768_p1 = scmp.eq.s32.totalorder %s1579_s13, 0 }
   0x8   : > { %p90_p3 = scmp.eq.s32.totalorder %s1317_s14, 1  ;;  %p1318_p5 = scmp.ge.s32.totalorder %s1533_s12, 1 }
   0x9   : > { %p1588_p4 = por %p2768_p1, %p39_p0  ;;  %p97_p7 = scmp.lt.s32.totalorder %s1533_s12, 3 }
   0xa   : > { %p1593_p6 = por %p90_p3, %p39_p0  ;;  %s1539_s18 = smov [#allocation5]  }
   0xb   : > { %s2775_s15 = scalar_select %p1588_p4, 1, 0 }
   0xc   : > { %s2776_s16 = scalar_select %p1593_p6, 1, 0 }
   0xd   : > { %p1598_p8 = pnand %p1318_p5, %p97_p7  ;;  %s110_s19 = sshll.u32 %s1539_s18, 4  ;;  %s111_s19 = int_to_ptr.vmem [resolvable:$true] %s110_s19 }
   0xe   : > { %s1606_s20 = sadd.s32 1, %s1533_s12   ;;  %s26_s24 = sadd.s32 1, %s1529_s11 }
   0xf   : > { %s2777_s17 = scalar_select %p1598_p8, 1, 0 }
  0x10   : > { %p1347_p10 = pneg %p1598_p8  ;;  %s23_s22 = ssub.s32 %s1533_s12, %s1606_s20 }
  0x11   : > { %p1616_p12 = scmp.eq.s32.totalorder %s23_s22, 0  ;;  %p33_p13 = scmp.ne.s32.totalorder %s1529_s11, %s1525_s10 }
  0x12   : > { %p1610_p11 = pnand %p1347_p10, %p2768_p1  ;;  %s1418_s25 = scalar_lea.vmem %s111_s19, 256 }
  0x13   : > { %p1419_p3 = scmp.ne.s32.totalorder %s111_s19, %s1418_s25  ;;  %p1426_p9 = scmp.lt.s32.totalorder %s111_s19, %s111_s19 }
  0x14   : > { %p1409_p0 = pneg %p1610_p11  ;;  %p1427_p2 = scmp.lt.s32.totalorder %s1418_s25, %s1418_s25 }
  0x16   : > { %p1421_p5 = pnand %p1419_p3, %p1409_p0  ;;  %p1428_p10 = por %p1427_p2, %p1426_p9 }
  0x18   : > { %p1422_p7 = pneg %p1421_p5 }
  0x1a   : > { %p1429_p1 = pnand %p1428_p10, %p1422_p7 }
  0x1c   : > { %1432 = shalt.err (!%p1429_p1)
}
  0x1d   : > { %1350 = dma.hbm_to_vmem [thread:$0]  (!%p1610_p11), %s2766_s1, 256, %s111_s19, [#allocation6]  }
  0x1e   : > { %s1633_s28 = scalar_select %p1616_p12, %s1529_s11, %s26_s24  }
  0x1f   : > { %p34_p1 = scmp.eq.s32.totalorder %s1533_s12, 0  ;;  %p2780_p2 = scmp.eq.s32.totalorder %s1579_s13, 1 }
  0x20   : > { %p1360_p0 = scmp.lt.s32.totalorder %s1533_s12, 2  ;;  %s121_s30 = sand.u32 1, %s1529_s11  }
  0x21   : > { %p1641_p9 = por %p2780_p2, %p33_p13  ;;  %p35_p3 = por %p34_p1, %p33_p13 }
  0x22   : > { %s1321_s3 = sshll.u32 %s121_s30, 4  ;;  %s1333_s4 = sshll.u32 %s1533_s12, 8 }
  0x23   : > { %s2781_s29 = scalar_select %p1641_p9, 1, 0 }
  0x24   : > { %s1654_s7 = scalar_lea.hbm %s2765_s0, %s1333_s4  ;;  %s125_s8 = scalar_lea.vmem [#allocation2], %s1321_s3 }
  0x25   : > { %s133_s14 = sshll.u32 %s125_s8, 4  ;;  %p1656_p11 = pnand %p1360_p0, %p35_p3  ;;  %s134_s14 = int_to_ptr.vmem [resolvable:$true] %s133_s14 }
  0x26   : > { %s122_s19 = scalar_lea.sflag [#allocation3], %s121_s30  ;;  %s1433_s21 = scalar_lea.hbm %s1654_s7, 256 }
  0x27   : > { %p1434_p12 = scmp.ne.s32.totalorder %s1654_s7, %s1433_s21  ;;  %p1435_p13 = pneg %p1656_p11 }
  0x28   : > { %s1438_s24 = scalar_lea.hbm %s2765_s0, 512  ;;  %p1439_p10 = scmp.lt.s32.totalorder %s1654_s7, %s2765_s0 }
  0x29   : > { %p1436_p5 = pnand %p1435_p13, %p1434_p12  ;;  %p1440_p1 = scmp.lt.s32.totalorder %s1438_s24, %s1433_s21 }
  0x2b   : > { %p1437_p7 = pneg %p1436_p5  ;;  %p1441_p2 = por %p1440_p1, %p1439_p10 }
  0x2d   : > { %p1442_p0 = pnand %p1441_p2, %p1437_p7 }
  0x2f   : > { %1445 = shalt.err (!%p1442_p0)
}
  0x30   : > { %s1446_s27 = scalar_lea.vmem %s134_s14, 256  ;;  %s1540_s30 = smov [#allocation2]  }
  0x31   : > { %p1447_p3 = scmp.ne.s32.totalorder %s134_s14, %s1446_s27  ;;  %s1451_s3 = sshll.u32 %s1540_s30, 4  ;;  %s1452_s3 = int_to_ptr.vmem [resolvable:$false] %s1451_s3 }
  0x32   : > { %s1453_s4 = scalar_lea.vmem %s1452_s3, 512  ;;  %p1454_p12 = scmp.lt.s32.totalorder %s134_s14, %s1452_s3 }
  0x33   : > { %p1449_p6 = pnand %p1447_p3, %p1435_p13  ;;  %p1455_p5 = scmp.lt.s32.totalorder %s1453_s4, %s1446_s27 }
  0x35   : > { %p1450_p9 = pneg %p1449_p6  ;;  %p1456_p4 = por %p1455_p5, %p1454_p12 }
  0x37   : > { %p1457_p8 = pnand %p1456_p4, %p1450_p9 }
  0x39   : > { %1460 = shalt.err (!%p1457_p8)
}
  0x3a   : > { %1354 = dma.hbm_to_vmem [thread:$0]  (!%p1656_p11), %s1654_s7, 256, %s134_s14, %s122_s19  }
  0x3b   : > { %p2783_p7 = scmp.ne.s32.totalorder %s2777_s17, 0 }
  0x3d   : > { %142 = sbr.rel (%p2783_p7) target bundleno = 505 (0x1f9), region = 28 }
  0x42   : > { %s1677_s5 = sand.u32 1, %s1525_s10   ;;  %p2784_p4 = scmp.ne.s32.totalorder %s2775_s15, 0 }
  0x43   : > { %s1325_s6 = sshll.u32 %s1677_s5, 4  ;;  %s145_s8 = scalar_lea.sflag [#allocation3], %s1677_s5 }
  0x44   : > { %s1683_s21 = scalar_lea.vmem [#allocation2], %s1325_s6 }
  0x45   : > { %1508 = dma.done.wait (%p2784_p4), %s145_s8, 256  }
  0x46   : > { %1510 = vsyncadd (%p2784_p4), %s145_s8, 4294967040  ;;  %p2785_p6 = scmp.eq.s32.totalorder %s1579_s13, 0 }
  0x48   : > { %1512 = dma.done.wait (%p2785_p6), [#allocation6], 256   ;;  %p2786_p8 = pmov %p2785_p6 }
  0x49   : > { %v175_v0 = vlaneseq  ;;  %v1731_v14 = vld [vmem:[#allocation5] sm:$0xff]  ;;  %v1733_v15 = vld [vmem:[#allocation5 + $0x8] sm:$0xff]  ;;  %s1796_s15 = scalar_lea.vmem [#allocation7], %s1325_s6  ;;  %s1800_s17 = smov 0  }
  0x4a   : > { %1514 = vsyncadd (%p2786_p8), [#allocation6], 4294967040  ;;  %2787 = vst [vmem:[#allocation11_spill] sm:$0xff] %v1731_v14  ;;  %v208_v24 = vld [vmem:[%s1683_s21] sm:$0xff]  ;;  %v209_v29 = vld [vmem:[%s1683_s21 + $0x8] sm:$0xff] }
  0x4b   : > { %v1693_v1 = vshrl.u32 %v175_v0, 7  ;;  %2788 = vst [vmem:[#allocation12_spill] sm:$0xff] %v1733_v15  ;;  %v210_v37 = vmul.f32 0.0078125, %v208_v24  ;;  %v211_v38 = vmul.f32 0.0078125, %v209_v29 }
  0x4d   : > { %v1696_v2 = vadd.s32 8, %v1693_v1  ;;  %v1699_v3 = vadd.s32 16, %v1693_v1  ;;  %v1702_v4 = vadd.s32 24, %v1693_v1  ;;  %v1705_v5 = vadd.s32 32, %v1693_v1  ;;  %212 = vst [vmem:[%s1796_s15] sm:$0xff] %v210_v37  ;;  %213 = vst [vmem:[%s1796_s15 + $0x8] sm:$0xff] %v211_v38 }
  0x4e   : > { %v1708_v6 = vadd.s32 40, %v1693_v1  ;;  %v1711_v7 = vadd.s32 48, %v1693_v1  ;;  %v1714_v8 = vadd.s32 56, %v1693_v1  ;;  %v1717_v9 = vadd.s32 64, %v1693_v1 }
  0x4f   : > { %v1720_v10 = vadd.s32 72, %v1693_v1  ;;  %v1723_v11 = vadd.s32 80, %v1693_v1  ;;  %v1726_v12 = vadd.s32 88, %v1693_v1  ;;  %v1729_v13 = vadd.s32 96, %v1693_v1 }
  0x50   : > { %v1736_v16 = vadd.s32 104, %v1693_v1  ;;  %v1739_v17 = vadd.s32 112, %v1693_v1  ;;  %v1742_v18 = vadd.s32 120, %v1693_v1  ;;  %v1745_v19 = vadd.s32 128, %v1693_v1 }
  0x51   : > { %v1748_v20 = vadd.s32 136, %v1693_v1  ;;  %v1751_v21 = vadd.s32 144, %v1693_v1  ;;  %v1754_v22 = vadd.s32 152, %v1693_v1  ;;  %v1757_v23 = vadd.s32 160, %v1693_v1 }
  0x52   : > { %2789 = vst [vmem:[#allocation13_spill] sm:$0xff] %v1745_v19  ;;  %v1761_v25 = vadd.s32 168, %v1693_v1  ;;  %v1764_v26 = vadd.s32 176, %v1693_v1  ;;  %v1767_v27 = vadd.s32 184, %v1693_v1  ;;  %v1770_v28 = vadd.s32 192, %v1693_v1 }
  0x53   : > { %v1774_v30 = vadd.s32 200, %v1693_v1  ;;  %v1777_v31 = vadd.s32 208, %v1693_v1  ;;  %v1780_v32 = vadd.s32 216, %v1693_v1  ;;  %v1783_v33 = vadd.s32 224, %v1693_v1 }
  0x54   : > { %v1786_v34 = vadd.s32 232, %v1693_v1  ;;  %v1789_v35 = vadd.s32 240, %v1693_v1  ;;  %v1792_v36 = vadd.s32 248, %v1693_v1 }
  0x55 LB: >> { %v221_v39 = vld [vmem:[%s1796_s15 + $0x8] sm:$0xff]  ;;  %v220_v40 = vld [vmem:[%s1796_s15] sm:$0xff]  ;;  %v1814_v53 = vsub.s32 0, %v1693_v1  ;;  %v2772_v0 = vmov 0   ;;  %s219_s17 = sadd.s32 1, %s1537_s17   ;;  %s1537_s17 = sphi %s1800_s17, %s219_s17  }
  0x56   : >> { %v2790_v15 = vld [vmem:[#allocation12_spill] sm:$0xff]  ;;  %v2791_v14 = vld [vmem:[#allocation11_spill] sm:$0xff]  ;;  %1206 = vmatprep.mubr.f32.mxu0 %v221_v39  ;;  %p216_p9 = scmp.ge.s32.totalorder %s219_s17, 7  }
  0x57   : >> { %v223_v41 = vadd.f32 %v221_v39, %v2790_v15  ;;  %v222_v42 = vadd.f32 %v220_v40, %v2791_v14  ;;  %s1334_s7 = sshll.u32 (%p216_p9), %s1579_s13, 8  ;;  %s1232_s22 = sshll.u32 (%p216_p9), %s1796_s15, 4  ;;  %s1233_s22 = int_to_ptr.vmem [resolvable:$true] %s1232_s22 }
  0x58   : > { %s1230_s19 = scalar_lea.hbm (%p216_p9), %s2767_s2, %s1334_s7  ;;  %s1218_s23 = scalar_lea.sflag (%p216_p9), [#allocation4], %s1677_s5 }
  0x59   : >> { %v225_v43 = vfloor.f32 %v223_v41  ;;  %v224_v44 = vfloor.f32 %v222_v42  ;;  %s1461_s24 = scalar_lea.vmem (%p216_p9), %s1233_s22, 256  ;;  %p2809_p13 = scmp.ne.s32.totalorder (%p216_p9), %s2781_s29, 0 }
  0x5a   : > { %p1462_p11 = scmp.ne.s32.totalorder (%p216_p9), %s1233_s22, %s1461_s24  ;;  %s1542_s25 = smov (%p216_p9), [#allocation7]  }
  0x5b   : >> { %v1337_v45 = vtrunc.f32 %v225_v43  ;;  %v229_v46 = vsub.f32 %v223_v41, %v225_v43  ;;  %v1335_v47 = vtrunc.f32 %v224_v44  ;;  %v1809_v48 = vsub.f32 %v222_v42, %v224_v44  ;;  %s1465_s26 = sshll.u32 (%p216_p9), %s1542_s25, 4  ;;  %s1466_s26 = int_to_ptr.vmem [resolvable:$false] %s1465_s26 }
  0x5c   : > { %p1463_p10 = pnand (%p216_p9), %p1462_p11, %p2809_p13  ;;  %s1467_s27 = scalar_lea.vmem (%p216_p9), %s1466_s26, 512 }
  0x5d   : >> { %v1338_v49 = vcvt.f32.s32 %v1337_v45  ;;  %v231_v50 = vsub.f32 1.0, %v229_v46  ;;  %v699_v51 = vrot.slane %v229_v46, 1  ;;  %v1811_v52 = vcvt.f32.s32 %v1335_v47  ;;  %p1468_p2 = scmp.lt.s32.totalorder (%p216_p9), %s1233_s22, %s1466_s26  ;;  %p1469_p0 = scmp.lt.s32.totalorder (%p216_p9), %s1467_s27, %s1461_s24 }
  0x5e   : >> { %v1817_v54 = vsub.f32 1.0, %v1809_v48  ;;  %v698_v55 = vrot.slane %v1809_v48, 1  ;;  %p1464_p1 = pneg (%p216_p9), %p1463_p10 }
  0x5f   : >> { %vm233_vm0 = vcmp.ge.s32.totalorder %v1338_v49, 0  ;;  %vm235_vm1 = vcmp.lt.s32.totalorder %v1338_v49, 16  ;;  %v239_v56 = vmul.u32 16, %v1338_v49  ;;  %v243_v57 = vrot.slane %v231_v50, 1  ;;  %p1470_p3 = por (%p216_p9), %p1469_p0, %p1468_p2 }
  0x60   : >> { %vm1820_vm2 = vmand %vm233_vm0, %vm235_vm1  ;;  %v257_v59 = vrot.slane %v1338_v49, 1  ;;  %v471_v60 = vadd.s32 1, %v1338_v49  ;;  %v703_v61 = vmul.f32 %v699_v51, %v231_v50  ;;  %v927_v62 = vmul.f32 %v699_v51, %v229_v46 }
  0x61   : >> { %v247_v63 = vmul.f32 %v243_v57, %v231_v50  ;;  %v249_v24 = vsel %vm1820_vm2, 1, %v2772_v0  ;;  %v481_v29 = vmul.f32 %v243_v57, %v229_v46  ;;  %vm232_vm3 = vcmp.ge.s32.totalorder %v1811_v52, 0  ;;  %p1471_p12 = pnand (%p216_p9), %p1470_p3, %p1464_p1 }
  0x62   : >> { %v251_v37 = vrot.slane %v249_v24, 1  ;;  %v259_v38 = vadd.s32 %v257_v59, %v239_v56  ;;  %vm473_vm4 = vcmp.ge.s32.totalorder %v471_v60, 0  ;;  %vm475_vm5 = vcmp.lt.s32.totalorder %v471_v60, 16 }
  0x63   : >> { %vm1828_vm6 = vmand %vm473_vm4, %vm475_vm5  ;;  %v479_v40 = vmul.u32 16, %v471_v60  ;;  %v713_v41 = vrot.slane %v471_v60, 1  ;;  %vm234_vm7 = vcmp.lt.s32.totalorder %v1811_v52, 16  ;;  %v2773_v42 = vmul.u32 16, %v1811_v52 }
  0x64   : >> { %vm1834_vm8 = vcmp.ne.s32.totalorder %v251_v37, 0  ;;  %v1839_v44 = vrot.slane %v259_v38, %v1814_v53  ;;  %v705_v45 = vsel %vm1828_vm6, 1, %v2772_v0  ;;  %vm1844_vm9 = vmand %vm232_vm3, %vm234_vm7  ;;  %v242_v47 = vrot.slane %v1817_v54, 1 }
  0x65   : >> { %vm255_vm10 = vmand %vm1820_vm2, %vm1834_vm8  ;;  %v485_v49 = vadd.s32 %v479_v40, %v257_v59  ;;  %v707_v50 = vrot.slane %v705_v45, 1  ;;  %v715_v51 = vadd.s32 %v713_v41, %v239_v56  ;;  %v931_v57 = vadd.s32 %v713_v41, %v479_v40 }
  0x66   : >> { %v261_v60 = vsel %vm255_vm10, %v247_v63, 0.0  ;;  %vm301_vm11 = vcmp.eq.s32.totalorder %v1742_v18, %v1839_v44  ;;  %vm483_vm12 = vmand %vm1828_vm6, %vm1834_vm8  ;;  %v246_v24 = vmul.f32 %v242_v47, %v1817_v54  ;;  %v248_v37 = vsel %vm1844_vm9, 1, %v2772_v0 }
  0x67   : >> { %v1864_v59 = vrot.slane %v261_v60, %v1814_v53  ;;  %v487_v56 = vsel %vm483_vm12, %v481_v29, 0.0  ;;  %v1867_v63 = vrot.slane %v485_v49, %v1814_v53  ;;  %vm709_vm13 = vcmp.ne.s32.totalorder %v707_v50, 0 }
  0x68   : >> { %v1870_v38 = vrot.slane %v487_v56, %v1814_v53  ;;  %vm711_vm14 = vmand %vm1820_vm2, %vm709_vm13  ;;  %v1875_v40 = vrot.slane %v715_v51, %v1814_v53  ;;  %v1878_v41 = vrot.slane %v931_v57, %v1814_v53  ;;  %v250_v43 = vrot.slane %v248_v37, 1 }
  0x69   : >> { %v373_v45 = vsel %vm301_vm11, %v1864_v59, 0.0  ;;  %vm527_vm15 = vcmp.eq.s32.totalorder %v1742_v18, %v1867_v63  ;;  %v717_v29 = vsel %vm711_vm14, %v703_v61, 0.0  ;;  %vm929_vm0 = vmand %vm1828_vm6, %vm709_vm13  ;;  %v256_v49 = vrot.slane %v1811_v52, 1 }
  0x6a   : >> { %v599_v58 = vsel %vm527_vm15, %v1870_v38, 0.0  ;;  %vm757_vm1 = vcmp.eq.s32.totalorder %v1742_v18, %v1875_v40  ;;  %v1890_v50 = vrot.slane %v717_v29, %v1814_v53  ;;  %v933_v51 = vsel %vm929_vm0, %v927_v62, 0.0 }
  0x6b   : >> { %v663_v57 = vadd.f32 %v599_v58, %v373_v45  ;;  %vm973_vm2 = vcmp.eq.s32.totalorder %v1742_v18, %v1878_v41  ;;  %v1895_v61 = vrot.slane %v933_v51, %v1814_v53  ;;  %vm1897_vm3 = vcmp.ne.s32.totalorder %v250_v43, 0 }
  0x6c   : >> { %v829_v60 = vsel %vm757_vm1, %v1890_v50, 0.0  ;;  %vm254_vm4 = vmand %vm1844_vm9, %vm1897_vm3  ;;  %v258_v62 = vadd.s32 %v256_v49, %v2773_v42  ;;  %v470_v37 = vadd.s32 1, %v1811_v52  ;;  %v480_v56 = vmul.f32 %v242_v47, %v1809_v48 }
  0x6d   : >> { %v893_v45 = vadd.f32 %v829_v60, %v663_v57  ;;  %v1045_v43 = vsel %vm973_vm2, %v1895_v61, 0.0  ;;  %v260_v29 = vsel %vm254_vm4, %v246_v24, 0.0  ;;  %v702_v58 = vmul.f32 %v698_v55, %v1817_v54 }
  0x6e   : >> { %v1915_v51 = vrot.slane %v258_v62, %v1814_v53  ;;  %v1918_v0 = vrot.slane %v260_v29, %v1814_v53  ;;  %vm472_vm5 = vcmp.ge.s32.totalorder %v470_v37, 0  ;;  %vm474_vm6 = vcmp.lt.s32.totalorder %v470_v37, 16 }
  0x6f   : >> { %v1109_v42 = vadd.f32 %v1045_v43, %v893_v45  ;;  %vm1920_vm7 = vmand %vm472_vm5, %vm474_vm6  ;;  %v478_v47 = vmul.u32 16, %v470_v37  ;;  %v712_v57 = vrot.slane %v470_v37, 1  ;;  %v926_v24 = vmul.f32 %v698_v55, %v1809_v48 }
  0x70   : >> { %vm300_vm8 = vcmp.eq.s32.totalorder %v1742_v18, %v1915_v51  ;;  %vm482_vm10 = vmand %vm1920_vm7, %vm1897_vm3  ;;  %v2804_v54 = vmov 0   ;;  %vm299_vm11 = vcmp.eq.s32.totalorder %v1739_v17, %v1839_v44  ;;  %vm525_vm12 = vcmp.eq.s32.totalorder %v1739_v17, %v1867_v63 }
  0x71   : >> { %v704_v60 = vsel %vm1920_vm7, 1, %v2804_v54  ;;  %1142 = vmatprep.subr.mxu0 %v1109_v42  ;;  %v372_v48 = vsel %vm300_vm8, %v1918_v0, 0.0  ;;  %v484_v55 = vadd.s32 %v478_v47, %v256_v49  ;;  %v486_v62 = vsel %vm482_vm10, %v480_v56, 0.0 }
  0x72   : >> { %v706_v37 = vrot.slane %v704_v60, 1  ;;  %v1942_v39 = vrot.slane %v486_v62, %v1814_v53  ;;  %v2805_v45 = vmul.u32 16, %v1811_v52  ;;  %v930_v29 = vadd.s32 %v712_v57, %v478_v47 }
  0x73   : >> { %v371_v54 = vsel %vm299_vm11, %v1864_v59, 0.0  ;;  %v1948_v15 = vrot.slane %v484_v55, %v1814_v53  ;;  %v597_v42 = vsel %vm525_vm12, %v1870_v38, 0.0  ;;  %vm755_vm14 = vcmp.eq.s32.totalorder %v1739_v17, %v1875_v40 }
  0x74   : >> { %v714_v43 = vadd.s32 %v712_v57, %v2805_v45  ;;  %vm1950_vm13 = vcmp.ne.s32.totalorder %v706_v37, 0  ;;  %v1965_v49 = vrot.slane %v930_v29, %v1814_v53  ;;  %v661_v56 = vadd.f32 %v597_v42, %v371_v54 }
  0x75   : >> { %vm710_vm15 = vmand %vm1844_vm9, %vm1950_vm13  ;;  %v827_v47 = vsel %vm755_vm14, %v1890_v50, 0.0  ;;  %vm526_vm0 = vcmp.eq.s32.totalorder %v1742_v18, %v1948_v15  ;;  %vm971_vm9 = vcmp.eq.s32.totalorder %v1739_v17, %v1878_v41  ;;  %vm298_vm2 = vcmp.eq.s32.totalorder %v1739_v17, %v1915_v51 }
  0x76   : >> { %v1962_v52 = vrot.slane %v714_v43, %v1814_v53  ;;  %v716_v57 = vsel %vm710_vm15, %v702_v58, 0.0  ;;  %vm928_vm1 = vmand %vm1920_vm7, %vm1950_vm13  ;;  %v598_v46 = vsel %vm526_vm0, %v1942_v39, 0.0  ;;  %vm972_vm4 = vcmp.eq.s32.totalorder %v1742_v18, %v1965_v49 }
  0x77   : >> { %v1982_v60 = vrot.slane %v716_v57, %v1814_v53  ;;  %v932_v58 = vsel %vm928_vm1, %v926_v24, 0.0  ;;  %v662_v55 = vadd.f32 %v598_v46, %v372_v48  ;;  %v891_v19 = vadd.f32 %v827_v47, %v661_v56 }
  0x78   : >> { %vm756_vm3 = vcmp.eq.s32.totalorder %v1742_v18, %v1962_v52  ;;  %v1987_v14 = vrot.slane %v932_v58, %v1814_v53  ;;  %v1043_v37 = vsel %vm971_vm9, %v1895_v61, 0.0  ;;  %v370_v45 = vsel %vm298_vm2, %v1918_v0, 0.0 }
  0x79   : >> { %v828_v62 = vsel %vm756_vm3, %v1982_v60, 0.0  ;;  %vm524_vm5 = vcmp.eq.s32.totalorder %v1739_v17, %v1948_v15  ;;  %v1107_v48 = vadd.f32 %v1043_v37, %v891_v19  ;;  %vm754_vm6 = vcmp.eq.s32.totalorder %v1739_v17, %v1962_v52 }
  0x7a   : >> { %v892_v43 = vadd.f32 %v828_v62, %v662_v55  ;;  %v1044_v24 = vsel %vm972_vm4, %v1987_v14, 0.0  ;;  %v596_v29 = vsel %vm524_vm5, %v1942_v39, 0.0  ;;  %vm970_vm7 = vcmp.eq.s32.totalorder %v1739_v17, %v1965_v49 }
  0x7b   : >> { %v660_v54 = vadd.f32 %v596_v29, %v370_v45  ;;  %vm297_vm8 = vcmp.eq.s32.totalorder %v1736_v16, %v1839_v44  ;;  %v826_v42 = vsel %vm754_vm6, %v1982_v60, 0.0  ;;  %v1042_v56 = vsel %vm970_vm7, %v1987_v14, 0.0 }
  0x7c   : >> { %v1108_v53 = vadd.f32 %v1044_v24, %v892_v43  ;;  %v369_v47 = vsel %vm297_vm8, %v1864_v59, 0.0  ;;  %vm523_vm10 = vcmp.eq.s32.totalorder %v1736_v16, %v1867_v63  ;;  %vm753_vm11 = vcmp.eq.s32.totalorder %v1736_v16, %v1875_v40 }
  0x7d   : >> { %v890_v57 = vadd.f32 %v826_v42, %v660_v54  ;;  %vm969_vm12 = vcmp.eq.s32.totalorder %v1736_v16, %v1878_v41  ;;  %v595_v46 = vsel %vm523_vm10, %v1870_v38, 0.0  ;;  %v825_v58 = vsel %vm753_vm11, %v1890_v50, 0.0 }
  0x7e   : >> { %1143 = vmatpush1.msra.mxu0 %v1108_v53  ;;  %v1041_v55 = vsel %vm969_vm12, %v1895_v61, 0.0  ;;  %vm296_vm13 = vcmp.eq.s32.totalorder %v1736_v16, %v1915_v51  ;;  %v659_v62 = vadd.f32 %v595_v46, %v369_v47  ;;  %vm522_vm14 = vcmp.eq.s32.totalorder %v1736_v16, %v1948_v15 }
  0x7f   : >> { %1144 = vmatprep.subr.mxu0 %v1107_v48  ;;  %v1106_v19 = vadd.f32 %v1042_v56, %v890_v57  ;;  %v368_v37 = vsel %vm296_vm13, %v1918_v0, 0.0  ;;  %v594_v45 = vsel %vm522_vm14, %v1942_v39, 0.0  ;;  %vm752_vm15 = vcmp.eq.s32.totalorder %v1736_v16, %v1962_v52 }
  0x80   : >> { %vm968_vm0 = vcmp.eq.s32.totalorder %v1736_v16, %v1965_v49  ;;  %vm295_vm1 = vcmp.eq.s32.totalorder %v1729_v13, %v1839_v44  ;;  %v889_v43 = vadd.f32 %v825_v58, %v659_v62  ;;  %v658_v24 = vadd.f32 %v594_v45, %v368_v37 }
  0x81   : >> { %1145 = vmatpush1.msra.mxu0 %v1106_v19  ;;  %v824_v48 = vsel %vm752_vm15, %v1982_v60, 0.0  ;;  %v1040_v29 = vsel %vm968_vm0, %v1987_v14, 0.0  ;;  %v367_v54 = vsel %vm295_vm1, %v1864_v59, 0.0  ;;  %vm521_vm9 = vcmp.eq.s32.totalorder %v1729_v13, %v1867_v63 }
  0x82   : >> { %vm751_vm2 = vcmp.eq.s32.totalorder %v1729_v13, %v1875_v40  ;;  %vm967_vm3 = vcmp.eq.s32.totalorder %v1729_v13, %v1878_v41  ;;  %v1105_v53 = vadd.f32 %v1041_v55, %v889_v43  ;;  %v888_v42 = vadd.f32 %v824_v48, %v658_v24 }
  0x83   : >> { %v593_v56 = vsel %vm521_vm9, %v1870_v38, 0.0  ;;  %v823_v47 = vsel %vm751_vm2, %v1890_v50, 0.0  ;;  %v1039_v46 = vsel %vm967_vm3, %v1895_v61, 0.0  ;;  %vm294_vm4 = vcmp.eq.s32.totalorder %v1729_v13, %v1915_v51 }
  0x84   : >> { %v657_v57 = vadd.f32 %v593_v56, %v367_v54  ;;  %vm520_vm5 = vcmp.eq.s32.totalorder %v1729_v13, %v1948_v15  ;;  %1146 = vmatprep.subr.mxu0 %v1105_v53  ;;  %v1104_v58 = vadd.f32 %v1040_v29, %v888_v42  ;;  %v366_v19 = vsel %vm294_vm4, %v1918_v0, 0.0 }
  0x85   : >> { %v592_v55 = vsel %vm520_vm5, %v1942_v39, 0.0  ;;  %vm750_vm6 = vcmp.eq.s32.totalorder %v1729_v13, %v1962_v52  ;;  %vm966_vm7 = vcmp.eq.s32.totalorder %v1729_v13, %v1965_v49  ;;  %vm293_vm8 = vcmp.eq.s32.totalorder %v1726_v12, %v1839_v44 }
  0x86   : >> { %v887_v62 = vadd.f32 %v823_v47, %v657_v57  ;;  %v656_v37 = vadd.f32 %v592_v55, %v366_v19  ;;  %v822_v45 = vsel %vm750_vm6, %v1982_v60, 0.0  ;;  %1147 = vmatpush1.msra.mxu0 %v1104_v58  ;;  %v1038_v43 = vsel %vm966_vm7, %v1987_v14, 0.0 }
  0x87   : >> { %vm519_vm10 = vcmp.eq.s32.totalorder %v1726_v12, %v1867_v63  ;;  %vm749_vm11 = vcmp.eq.s32.totalorder %v1726_v12, %v1875_v40  ;;  %v365_v29 = vsel %vm293_vm8, %v1864_v59, 0.0  ;;  %vm965_vm12 = vcmp.eq.s32.totalorder %v1726_v12, %v1878_v41 }
  0x88   : >> { %v1103_v24 = vadd.f32 %v1039_v46, %v887_v62  ;;  %v886_v48 = vadd.f32 %v822_v45, %v656_v37  ;;  %v591_v54 = vsel %vm519_vm10, %v1870_v38, 0.0  ;;  %v821_v42 = vsel %vm749_vm11, %v1890_v50, 0.0 }
  0x89   : >> { %v655_v53 = vadd.f32 %v591_v54, %v365_v29  ;;  %vm292_vm13 = vcmp.eq.s32.totalorder %v1726_v12, %v1915_v51  ;;  %v1037_v47 = vsel %vm965_vm12, %v1895_v61, 0.0  ;;  %vm518_vm14 = vcmp.eq.s32.totalorder %v1726_v12, %v1948_v15 }
  0x8a   : >> { %1148 = vmatprep.subr.mxu0 %v1103_v24  ;;  %v1102_v56 = vadd.f32 %v1038_v43, %v886_v48  ;;  %v364_v57 = vsel %vm292_vm13, %v1918_v0, 0.0  ;;  %v590_v58 = vsel %vm518_vm14, %v1942_v39, 0.0  ;;  %vm748_vm15 = vcmp.eq.s32.totalorder %v1726_v12, %v1962_v52 }
  0x8b   : >> { %v885_v46 = vadd.f32 %v821_v42, %v655_v53  ;;  %vm964_vm0 = vcmp.eq.s32.totalorder %v1726_v12, %v1965_v49  ;;  %v654_v19 = vadd.f32 %v590_v58, %v364_v57  ;;  %v820_v55 = vsel %vm748_vm15, %v1982_v60, 0.0 }
  0x8c   : >> { %1149 = vmatpush1.msra.mxu0 %v1102_v56  ;;  %v1036_v62 = vsel %vm964_vm0, %v1987_v14, 0.0  ;;  %vm291_vm1 = vcmp.eq.s32.totalorder %v1723_v11, %v1839_v44  ;;  %vm517_vm9 = vcmp.eq.s32.totalorder %v1723_v11, %v1867_v63  ;;  %vm747_vm2 = vcmp.eq.s32.totalorder %v1723_v11, %v1875_v40 }
  0x8d   : >> { %v1101_v37 = vadd.f32 %v1037_v47, %v885_v46  ;;  %v363_v45 = vsel %vm291_vm1, %v1864_v59, 0.0  ;;  %v884_v43 = vadd.f32 %v820_v55, %v654_v19  ;;  %v589_v24 = vsel %vm517_vm9, %v1870_v38, 0.0 }
  0x8e   : >> { %v819_v48 = vsel %vm747_vm2, %v1890_v50, 0.0  ;;  %vm963_vm3 = vcmp.eq.s32.totalorder %v1723_v11, %v1878_v41  ;;  %v653_v29 = vadd.f32 %v589_v24, %v363_v45  ;;  %vm290_vm4 = vcmp.eq.s32.totalorder %v1723_v11, %v1915_v51 }
  0x8f   : >> { %1150 = vmatprep.subr.mxu0 %v1101_v37  ;;  %v1035_v54 = vsel %vm963_vm3, %v1895_v61, 0.0  ;;  %vm516_vm5 = vcmp.eq.s32.totalorder %v1723_v11, %v1948_v15  ;;  %v1100_v53 = vadd.f32 %v1036_v62, %v884_v43  ;;  %v362_v42 = vsel %vm290_vm4, %v1918_v0, 0.0 }
  0x90   : >> { %v588_v56 = vsel %vm516_vm5, %v1942_v39, 0.0  ;;  %vm746_vm6 = vcmp.eq.s32.totalorder %v1723_v11, %v1962_v52  ;;  %v883_v47 = vadd.f32 %v819_v48, %v653_v29  ;;  %vm962_vm7 = vcmp.eq.s32.totalorder %v1723_v11, %v1965_v49 }
  0x91   : >> { %v652_v57 = vadd.f32 %v588_v56, %v362_v42  ;;  %v818_v46 = vsel %vm746_vm6, %v1982_v60, 0.0  ;;  %1151 = vmatpush1.msra.mxu0 %v1100_v53  ;;  %v1034_v58 = vsel %vm962_vm7, %v1987_v14, 0.0  ;;  %vm289_vm8 = vcmp.eq.s32.totalorder %v1720_v10, %v1839_v44 }
  0x92   : >> { %vm515_vm10 = vcmp.eq.s32.totalorder %v1720_v10, %v1867_v63  ;;  %vm745_vm11 = vcmp.eq.s32.totalorder %v1720_v10, %v1875_v40  ;;  %v1099_v19 = vadd.f32 %v1035_v54, %v883_v47  ;;  %v361_v62 = vsel %vm289_vm8, %v1864_v59, 0.0 }
  0x93   : >> { %v882_v55 = vadd.f32 %v818_v46, %v652_v57  ;;  %v587_v37 = vsel %vm515_vm10, %v1870_v38, 0.0  ;;  %v817_v43 = vsel %vm745_vm11, %v1890_v50, 0.0  ;;  %vm961_vm12 = vcmp.eq.s32.totalorder %v1720_v10, %v1878_v41 }
  0x94   : >> { %v651_v45 = vadd.f32 %v587_v37, %v361_v62  ;;  %vm288_vm13 = vcmp.eq.s32.totalorder %v1720_v10, %v1915_v51  ;;  %1152 = vmatprep.subr.mxu0 %v1099_v19  ;;  %v1033_v48 = vsel %vm961_vm12, %v1895_v61, 0.0  ;;  %vm514_vm14 = vcmp.eq.s32.totalorder %v1720_v10, %v1948_v15 }
  0x95   : >> { %v1098_v24 = vadd.f32 %v1034_v58, %v882_v55  ;;  %v360_v29 = vsel %vm288_vm13, %v1918_v0, 0.0  ;;  %v586_v53 = vsel %vm514_vm14, %v1942_v39, 0.0  ;;  %vm744_vm15 = vcmp.eq.s32.totalorder %v1720_v10, %v1962_v52 }
  0x96   : >> { %v881_v54 = vadd.f32 %v817_v43, %v651_v45  ;;  %vm960_vm0 = vcmp.eq.s32.totalorder %v1720_v10, %v1965_v49  ;;  %v650_v42 = vadd.f32 %v586_v53, %v360_v29  ;;  %v816_v56 = vsel %vm744_vm15, %v1982_v60, 0.0 }
  0x97   : >> { %1153 = vmatpush1.msra.mxu0 %v1098_v24  ;;  %v1032_v47 = vsel %vm960_vm0, %v1987_v14, 0.0  ;;  %vm287_vm1 = vcmp.eq.s32.totalorder %v1717_v9, %v1839_v44  ;;  %vm513_vm9 = vcmp.eq.s32.totalorder %v1717_v9, %v1867_v63  ;;  %vm743_vm2 = vcmp.eq.s32.totalorder %v1717_v9, %v1875_v40 }
  0x98   : >> { %v1097_v57 = vadd.f32 %v1033_v48, %v881_v54  ;;  %v359_v46 = vsel %vm287_vm1, %v1864_v59, 0.0  ;;  %v880_v58 = vadd.f32 %v816_v56, %v650_v42  ;;  %v585_v19 = vsel %vm513_vm9, %v1870_v38, 0.0 }
  0x99   : >> { %v815_v55 = vsel %vm743_vm2, %v1890_v50, 0.0  ;;  %vm959_vm3 = vcmp.eq.s32.totalorder %v1717_v9, %v1878_v41  ;;  %v649_v62 = vadd.f32 %v585_v19, %v359_v46  ;;  %vm286_vm4 = vcmp.eq.s32.totalorder %v1717_v9, %v1915_v51 }
  0x9a   : >> { %1154 = vmatprep.subr.mxu0 %v1097_v57  ;;  %v1031_v37 = vsel %vm959_vm3, %v1895_v61, 0.0  ;;  %vm512_vm5 = vcmp.eq.s32.totalorder %v1717_v9, %v1948_v15  ;;  %v1096_v45 = vadd.f32 %v1032_v47, %v880_v58  ;;  %v358_v43 = vsel %vm286_vm4, %v1918_v0, 0.0 }
  0x9b   : >> { %v584_v24 = vsel %vm512_vm5, %v1942_v39, 0.0  ;;  %vm742_vm6 = vcmp.eq.s32.totalorder %v1717_v9, %v1962_v52  ;;  %v879_v48 = vadd.f32 %v815_v55, %v649_v62  ;;  %vm958_vm7 = vcmp.eq.s32.totalorder %v1717_v9, %v1965_v49 }
  0x9c   : >> { %v648_v29 = vadd.f32 %v584_v24, %v358_v43  ;;  %v814_v54 = vsel %vm742_vm6, %v1982_v60, 0.0  ;;  %1155 = vmatpush1.msra.mxu0 %v1096_v45  ;;  %v1030_v53 = vsel %vm958_vm7, %v1987_v14, 0.0  ;;  %vm285_vm8 = vcmp.eq.s32.totalorder %v1714_v8, %v1839_v44 }
  0x9d   : >> { %vm511_vm10 = vcmp.eq.s32.totalorder %v1714_v8, %v1867_v63  ;;  %vm741_vm11 = vcmp.eq.s32.totalorder %v1714_v8, %v1875_v40  ;;  %v1095_v42 = vadd.f32 %v1031_v37, %v879_v48  ;;  %v357_v47 = vsel %vm285_vm8, %v1864_v59, 0.0 }
  0x9e   : >> { %v878_v56 = vadd.f32 %v814_v54, %v648_v29  ;;  %v583_v57 = vsel %vm511_vm10, %v1870_v38, 0.0  ;;  %v813_v58 = vsel %vm741_vm11, %v1890_v50, 0.0  ;;  %vm957_vm12 = vcmp.eq.s32.totalorder %v1714_v8, %v1878_v41 }
  0x9f   : >> { %v647_v46 = vadd.f32 %v583_v57, %v357_v47  ;;  %vm284_vm13 = vcmp.eq.s32.totalorder %v1714_v8, %v1915_v51  ;;  %1156 = vmatprep.subr.mxu0 %v1095_v42  ;;  %v1029_v55 = vsel %vm957_vm12, %v1895_v61, 0.0  ;;  %vm510_vm14 = vcmp.eq.s32.totalorder %v1714_v8, %v1948_v15 }
  0xa0   : >> { %v1094_v19 = vadd.f32 %v1030_v53, %v878_v56  ;;  %v356_v62 = vsel %vm284_vm13, %v1918_v0, 0.0  ;;  %v582_v45 = vsel %vm510_vm14, %v1942_v39, 0.0  ;;  %vm740_vm15 = vcmp.eq.s32.totalorder %v1714_v8, %v1962_v52 }
  0xa1   : >> { %v877_v37 = vadd.f32 %v813_v58, %v647_v46  ;;  %vm956_vm0 = vcmp.eq.s32.totalorder %v1714_v8, %v1965_v49  ;;  %v646_v43 = vadd.f32 %v582_v45, %v356_v62  ;;  %v812_v24 = vsel %vm740_vm15, %v1982_v60, 0.0 }
  0xa2   : >> { %1157 = vmatpush1.msra.mxu0 %v1094_v19  ;;  %v1028_v48 = vsel %vm956_vm0, %v1987_v14, 0.0  ;;  %vm283_vm1 = vcmp.eq.s32.totalorder %v1711_v7, %v1839_v44  ;;  %vm509_vm9 = vcmp.eq.s32.totalorder %v1711_v7, %v1867_v63  ;;  %vm739_vm2 = vcmp.eq.s32.totalorder %v1711_v7, %v1875_v40 }
  0xa3   : >> { %v1093_v29 = vadd.f32 %v1029_v55, %v877_v37  ;;  %v355_v54 = vsel %vm283_vm1, %v1864_v59, 0.0  ;;  %v876_v53 = vadd.f32 %v812_v24, %v646_v43  ;;  %v581_v42 = vsel %vm509_vm9, %v1870_v38, 0.0 }
  0xa4   : >> { %v811_v56 = vsel %vm739_vm2, %v1890_v50, 0.0  ;;  %vm955_vm3 = vcmp.eq.s32.totalorder %v1711_v7, %v1878_v41  ;;  %v645_v47 = vadd.f32 %v581_v42, %v355_v54  ;;  %vm282_vm4 = vcmp.eq.s32.totalorder %v1711_v7, %v1915_v51 }
  0xa5   : >> { %1158 = vmatprep.subr.mxu0 %v1093_v29  ;;  %v1027_v57 = vsel %vm955_vm3, %v1895_v61, 0.0  ;;  %vm508_vm5 = vcmp.eq.s32.totalorder %v1711_v7, %v1948_v15  ;;  %v1092_v46 = vadd.f32 %v1028_v48, %v876_v53  ;;  %v354_v58 = vsel %vm282_vm4, %v1918_v0, 0.0 }
  0xa6   : >> { %v580_v19 = vsel %vm508_vm5, %v1942_v39, 0.0  ;;  %vm738_vm6 = vcmp.eq.s32.totalorder %v1711_v7, %v1962_v52  ;;  %v875_v55 = vadd.f32 %v811_v56, %v645_v47  ;;  %vm954_vm7 = vcmp.eq.s32.totalorder %v1711_v7, %v1965_v49 }
  0xa7   : >> { %v644_v62 = vadd.f32 %v580_v19, %v354_v58  ;;  %v810_v37 = vsel %vm738_vm6, %v1982_v60, 0.0  ;;  %1159 = vmatpush1.msra.mxu0 %v1092_v46  ;;  %v1026_v45 = vsel %vm954_vm7, %v1987_v14, 0.0  ;;  %vm281_vm8 = vcmp.eq.s32.totalorder %v1708_v6, %v1839_v44 }
  0xa8   : >> { %vm507_vm10 = vcmp.eq.s32.totalorder %v1708_v6, %v1867_v63  ;;  %vm737_vm11 = vcmp.eq.s32.totalorder %v1708_v6, %v1875_v40  ;;  %v1091_v43 = vadd.f32 %v1027_v57, %v875_v55  ;;  %v353_v48 = vsel %vm281_vm8, %v1864_v59, 0.0 }
  0xa9   : >> { %v874_v24 = vadd.f32 %v810_v37, %v644_v62  ;;  %v579_v29 = vsel %vm507_vm10, %v1870_v38, 0.0  ;;  %v809_v53 = vsel %vm737_vm11, %v1890_v50, 0.0  ;;  %vm953_vm12 = vcmp.eq.s32.totalorder %v1708_v6, %v1878_v41 }
  0xaa   : >> { %v643_v54 = vadd.f32 %v579_v29, %v353_v48  ;;  %vm280_vm13 = vcmp.eq.s32.totalorder %v1708_v6, %v1915_v51  ;;  %1160 = vmatprep.subr.mxu0 %v1091_v43  ;;  %v1025_v56 = vsel %vm953_vm12, %v1895_v61, 0.0  ;;  %vm506_vm14 = vcmp.eq.s32.totalorder %v1708_v6, %v1948_v15 }
  0xab   : >> { %v1090_v42 = vadd.f32 %v1026_v45, %v874_v24  ;;  %v352_v47 = vsel %vm280_vm13, %v1918_v0, 0.0  ;;  %v578_v46 = vsel %vm506_vm14, %v1942_v39, 0.0  ;;  %vm736_vm15 = vcmp.eq.s32.totalorder %v1708_v6, %v1962_v52 }
  0xac   : >> { %v873_v57 = vadd.f32 %v809_v53, %v643_v54  ;;  %vm952_vm0 = vcmp.eq.s32.totalorder %v1708_v6, %v1965_v49  ;;  %v642_v58 = vadd.f32 %v578_v46, %v352_v47  ;;  %v808_v19 = vsel %vm736_vm15, %v1982_v60, 0.0 }
  0xad   : >> { %1161 = vmatpush1.msra.mxu0 %v1090_v42  ;;  %v1024_v55 = vsel %vm952_vm0, %v1987_v14, 0.0  ;;  %vm279_vm1 = vcmp.eq.s32.totalorder %v1705_v5, %v1839_v44  ;;  %vm505_vm9 = vcmp.eq.s32.totalorder %v1705_v5, %v1867_v63  ;;  %vm735_vm2 = vcmp.eq.s32.totalorder %v1705_v5, %v1875_v40 }
  0xae   : >> { %v1089_v62 = vadd.f32 %v1025_v56, %v873_v57  ;;  %v351_v37 = vsel %vm279_vm1, %v1864_v59, 0.0  ;;  %v872_v45 = vadd.f32 %v808_v19, %v642_v58  ;;  %v577_v43 = vsel %vm505_vm9, %v1870_v38, 0.0 }
  0xaf   : >> { %v807_v24 = vsel %vm735_vm2, %v1890_v50, 0.0  ;;  %vm951_vm3 = vcmp.eq.s32.totalorder %v1705_v5, %v1878_v41  ;;  %v641_v48 = vadd.f32 %v577_v43, %v351_v37  ;;  %vm278_vm4 = vcmp.eq.s32.totalorder %v1705_v5, %v1915_v51 }
  0xb0   : >> { %1162 = vmatprep.subr.mxu0 %v1089_v62  ;;  %v1023_v29 = vsel %vm951_vm3, %v1895_v61, 0.0  ;;  %vm504_vm5 = vcmp.eq.s32.totalorder %v1705_v5, %v1948_v15  ;;  %v1088_v54 = vadd.f32 %v1024_v55, %v872_v45  ;;  %v350_v53 = vsel %vm278_vm4, %v1918_v0, 0.0 }
  0xb1   : >> { %v576_v42 = vsel %vm504_vm5, %v1942_v39, 0.0  ;;  %vm734_vm6 = vcmp.eq.s32.totalorder %v1705_v5, %v1962_v52  ;;  %v871_v56 = vadd.f32 %v807_v24, %v641_v48  ;;  %vm950_vm7 = vcmp.eq.s32.totalorder %v1705_v5, %v1965_v49 }
  0xb2   : >> { %v640_v47 = vadd.f32 %v576_v42, %v350_v53  ;;  %v806_v57 = vsel %vm734_vm6, %v1982_v60, 0.0  ;;  %1163 = vmatpush1.msra.mxu0 %v1088_v54  ;;  %v1022_v46 = vsel %vm950_vm7, %v1987_v14, 0.0  ;;  %vm277_vm8 = vcmp.eq.s32.totalorder %v1702_v4, %v1839_v44 }
  0xb3   : >> { %vm503_vm10 = vcmp.eq.s32.totalorder %v1702_v4, %v1867_v63  ;;  %vm733_vm11 = vcmp.eq.s32.totalorder %v1702_v4, %v1875_v40  ;;  %v1087_v58 = vadd.f32 %v1023_v29, %v871_v56  ;;  %v349_v55 = vsel %vm277_vm8, %v1864_v59, 0.0 }
  0xb4   : >> { %v870_v19 = vadd.f32 %v806_v57, %v640_v47  ;;  %v575_v62 = vsel %vm503_vm10, %v1870_v38, 0.0  ;;  %v805_v45 = vsel %vm733_vm11, %v1890_v50, 0.0  ;;  %vm949_vm12 = vcmp.eq.s32.totalorder %v1702_v4, %v1878_v41 }
  0xb5   : >> { %v639_v37 = vadd.f32 %v575_v62, %v349_v55  ;;  %vm276_vm13 = vcmp.eq.s32.totalorder %v1702_v4, %v1915_v51  ;;  %1164 = vmatprep.subr.mxu0 %v1087_v58  ;;  %v1021_v24 = vsel %vm949_vm12, %v1895_v61, 0.0  ;;  %vm502_vm14 = vcmp.eq.s32.totalorder %v1702_v4, %v1948_v15 }
  0xb6   : >> { %v1086_v43 = vadd.f32 %v1022_v46, %v870_v19  ;;  %v348_v48 = vsel %vm276_vm13, %v1918_v0, 0.0  ;;  %v574_v54 = vsel %vm502_vm14, %v1942_v39, 0.0  ;;  %vm732_vm15 = vcmp.eq.s32.totalorder %v1702_v4, %v1962_v52 }
  0xb7   : >> { %v869_v29 = vadd.f32 %v805_v45, %v639_v37  ;;  %vm948_vm0 = vcmp.eq.s32.totalorder %v1702_v4, %v1965_v49  ;;  %v638_v53 = vadd.f32 %v574_v54, %v348_v48  ;;  %v804_v42 = vsel %vm732_vm15, %v1982_v60, 0.0 }
  0xb8   : >> { %1165 = vmatpush1.msra.mxu0 %v1086_v43  ;;  %v1020_v56 = vsel %vm948_vm0, %v1987_v14, 0.0  ;;  %vm275_vm1 = vcmp.eq.s32.totalorder %v1699_v3, %v1839_v44  ;;  %vm501_vm9 = vcmp.eq.s32.totalorder %v1699_v3, %v1867_v63  ;;  %vm731_vm2 = vcmp.eq.s32.totalorder %v1699_v3, %v1875_v40 }
  0xb9   : >> { %v1085_v47 = vadd.f32 %v1021_v24, %v869_v29  ;;  %v347_v57 = vsel %vm275_vm1, %v1864_v59, 0.0  ;;  %v868_v46 = vadd.f32 %v804_v42, %v638_v53  ;;  %v573_v58 = vsel %vm501_vm9, %v1870_v38, 0.0 }
  0xba   : >> { %v803_v19 = vsel %vm731_vm2, %v1890_v50, 0.0  ;;  %vm947_vm3 = vcmp.eq.s32.totalorder %v1699_v3, %v1878_v41  ;;  %v637_v55 = vadd.f32 %v573_v58, %v347_v57  ;;  %vm274_vm4 = vcmp.eq.s32.totalorder %v1699_v3, %v1915_v51 }
  0xbb   : >> { %1166 = vmatprep.subr.mxu0 %v1085_v47  ;;  %v1019_v62 = vsel %vm947_vm3, %v1895_v61, 0.0  ;;  %vm500_vm5 = vcmp.eq.s32.totalorder %v1699_v3, %v1948_v15  ;;  %v1084_v37 = vadd.f32 %v1020_v56, %v868_v46  ;;  %v346_v45 = vsel %vm274_vm4, %v1918_v0, 0.0 }
  0xbc   : >> { %v572_v43 = vsel %vm500_vm5, %v1942_v39, 0.0  ;;  %vm730_vm6 = vcmp.eq.s32.totalorder %v1699_v3, %v1962_v52  ;;  %v867_v24 = vadd.f32 %v803_v19, %v637_v55  ;;  %vm946_vm7 = vcmp.eq.s32.totalorder %v1699_v3, %v1965_v49 }
  0xbd   : >> { %v636_v48 = vadd.f32 %v572_v43, %v346_v45  ;;  %v802_v29 = vsel %vm730_vm6, %v1982_v60, 0.0  ;;  %1167 = vmatpush1.msra.mxu0 %v1084_v37  ;;  %v1018_v54 = vsel %vm946_vm7, %v1987_v14, 0.0  ;;  %vm273_vm8 = vcmp.eq.s32.totalorder %v1696_v2, %v1839_v44 }
  0xbe   : >> { %vm499_vm10 = vcmp.eq.s32.totalorder %v1696_v2, %v1867_v63  ;;  %vm729_vm11 = vcmp.eq.s32.totalorder %v1696_v2, %v1875_v40  ;;  %v1083_v53 = vadd.f32 %v1019_v62, %v867_v24  ;;  %v345_v56 = vsel %vm273_vm8, %v1864_v59, 0.0 }
  0xbf   : >> { %v866_v42 = vadd.f32 %v802_v29, %v636_v48  ;;  %v571_v47 = vsel %vm499_vm10, %v1870_v38, 0.0  ;;  %v801_v46 = vsel %vm729_vm11, %v1890_v50, 0.0  ;;  %vm945_vm12 = vcmp.eq.s32.totalorder %v1696_v2, %v1878_v41 }
  0xc0   : >> { %v635_v57 = vadd.f32 %v571_v47, %v345_v56  ;;  %vm272_vm13 = vcmp.eq.s32.totalorder %v1696_v2, %v1915_v51  ;;  %1168 = vmatprep.subr.mxu0 %v1083_v53  ;;  %v1017_v19 = vsel %vm945_vm12, %v1895_v61, 0.0  ;;  %vm498_vm14 = vcmp.eq.s32.totalorder %v1696_v2, %v1948_v15 }
  0xc1   : >> { %v1082_v58 = vadd.f32 %v1018_v54, %v866_v42  ;;  %v344_v55 = vsel %vm272_vm13, %v1918_v0, 0.0  ;;  %v570_v37 = vsel %vm498_vm14, %v1942_v39, 0.0  ;;  %vm728_vm15 = vcmp.eq.s32.totalorder %v1696_v2, %v1962_v52 }
  0xc2   : >> { %v865_v62 = vadd.f32 %v801_v46, %v635_v57  ;;  %vm944_vm0 = vcmp.eq.s32.totalorder %v1696_v2, %v1965_v49  ;;  %v634_v45 = vadd.f32 %v570_v37, %v344_v55  ;;  %v800_v43 = vsel %vm728_vm15, %v1982_v60, 0.0 }
  0xc3   : >> { %1169 = vmatpush1.msra.mxu0 %v1082_v58  ;;  %v1016_v24 = vsel %vm944_vm0, %v1987_v14, 0.0  ;;  %vm271_vm1 = vcmp.eq.s32.totalorder %v1693_v1, %v1839_v44  ;;  %vm497_vm9 = vcmp.eq.s32.totalorder %v1693_v1, %v1867_v63  ;;  %vm727_vm2 = vcmp.eq.s32.totalorder %v1693_v1, %v1875_v40 }
  0xc4   : >> { %v1081_v48 = vadd.f32 %v1017_v19, %v865_v62  ;;  %v343_v29 = vsel %vm271_vm1, %v1864_v59, 0.0  ;;  %v864_v54 = vadd.f32 %v800_v43, %v634_v45  ;;  %v569_v53 = vsel %vm497_vm9, %v1870_v38, 0.0 }
  0xc5   : >> { %v799_v42 = vsel %vm727_vm2, %v1890_v50, 0.0  ;;  %vm943_vm3 = vcmp.eq.s32.totalorder %v1693_v1, %v1878_v41  ;;  %v633_v56 = vadd.f32 %v569_v53, %v343_v29  ;;  %vm270_vm4 = vcmp.eq.s32.totalorder %v1693_v1, %v1915_v51 }
  0xc6   : >> { %1170 = vmatprep.subr.mxu0 %v1081_v48  ;;  %v1015_v47 = vsel %vm943_vm3, %v1895_v61, 0.0  ;;  %vm496_vm5 = vcmp.eq.s32.totalorder %v1693_v1, %v1948_v15  ;;  %v1080_v57 = vadd.f32 %v1016_v24, %v864_v54  ;;  %v342_v46 = vsel %vm270_vm4, %v1918_v0, 0.0 }
  0xc7   : >> { %v568_v58 = vsel %vm496_vm5, %v1942_v39, 0.0  ;;  %vm726_vm6 = vcmp.eq.s32.totalorder %v1693_v1, %v1962_v52  ;;  %v863_v19 = vadd.f32 %v799_v42, %v633_v56  ;;  %vm942_vm7 = vcmp.eq.s32.totalorder %v1693_v1, %v1965_v49 }
  0xc8   : >> { %v632_v55 = vadd.f32 %v568_v58, %v342_v46  ;;  %v798_v62 = vsel %vm726_vm6, %v1982_v60, 0.0  ;;  %1171 = vmatpush1.msra.mxu0 %v1080_v57  ;;  %v1014_v37 = vsel %vm942_vm7, %v1987_v14, 0.0  ;;  %vm333_vm8 = vcmp.eq.s32.totalorder %v1792_v36, %v1839_v44 }
  0xc9   : >> { %vm559_vm10 = vcmp.eq.s32.totalorder %v1792_v36, %v1867_v63  ;;  %vm789_vm11 = vcmp.eq.s32.totalorder %v1792_v36, %v1875_v40  ;;  %v1079_v45 = vadd.f32 %v1015_v47, %v863_v19  ;;  %v405_v24 = vsel %vm333_vm8, %v1864_v59, 0.0 }
  0xca   : >> { %v862_v43 = vadd.f32 %v798_v62, %v632_v55  ;;  %v631_v48 = vsel %vm559_vm10, %v1870_v38, 0.0  ;;  %v861_v54 = vsel %vm789_vm11, %v1890_v50, 0.0  ;;  %vm1005_vm12 = vcmp.eq.s32.totalorder %v1792_v36, %v1878_v41 }
  0xcb   : >> { %v695_v29 = vadd.f32 %v631_v48, %v405_v24  ;;  %vm332_vm13 = vcmp.eq.s32.totalorder %v1792_v36, %v1915_v51  ;;  %1172 = vmatprep.subr.mxu0 %v1079_v45  ;;  %v1077_v42 = vsel %vm1005_vm12, %v1895_v61, 0.0  ;;  %vm558_vm14 = vcmp.eq.s32.totalorder %v1792_v36, %v1948_v15 }
  0xcc   : >> { %v1078_v53 = vadd.f32 %v1014_v37, %v862_v43  ;;  %v404_v56 = vsel %vm332_vm13, %v1918_v0, 0.0  ;;  %v630_v57 = vsel %vm558_vm14, %v1942_v39, 0.0  ;;  %vm788_vm15 = vcmp.eq.s32.totalorder %v1792_v36, %v1962_v52 }
  0xcd   : >> { %v925_v47 = vadd.f32 %v861_v54, %v695_v29  ;;  %vm1004_vm0 = vcmp.eq.s32.totalorder %v1792_v36, %v1965_v49  ;;  %v694_v46 = vadd.f32 %v630_v57, %v404_v56  ;;  %v860_v58 = vsel %vm788_vm15, %v1982_v60, 0.0 }
  0xce   : >> { %1173 = vmatpush1.msra.mxu0 %v1078_v53  ;;  %v1076_v19 = vsel %vm1004_vm0, %v1987_v14, 0.0  ;;  %vm331_vm1 = vcmp.eq.s32.totalorder %v1789_v35, %v1839_v44  ;;  %vm557_vm9 = vcmp.eq.s32.totalorder %v1789_v35, %v1867_v63  ;;  %vm787_vm2 = vcmp.eq.s32.totalorder %v1789_v35, %v1875_v40 }
  0xcf   : >> { %v1141_v55 = vadd.f32 %v1077_v42, %v925_v47  ;;  %v403_v62 = vsel %vm331_vm1, %v1864_v59, 0.0  ;;  %v924_v37 = vadd.f32 %v860_v58, %v694_v46  ;;  %v629_v45 = vsel %vm557_vm9, %v1870_v38, 0.0 }
  0xd0   : >> { %v859_v43 = vsel %vm787_vm2, %v1890_v50, 0.0  ;;  %vm1003_vm3 = vcmp.eq.s32.totalorder %v1789_v35, %v1878_v41  ;;  %v693_v24 = vadd.f32 %v629_v45, %v403_v62  ;;  %vm330_vm4 = vcmp.eq.s32.totalorder %v1789_v35, %v1915_v51 }
  0xd1   : >> { %1174 = vmatprep.subr.mxu0 %v1141_v55  ;;  %v1075_v48 = vsel %vm1003_vm3, %v1895_v61, 0.0  ;;  %vm556_vm5 = vcmp.eq.s32.totalorder %v1789_v35, %v1948_v15  ;;  %v1140_v29 = vadd.f32 %v1076_v19, %v924_v37  ;;  %v402_v54 = vsel %vm330_vm4, %v1918_v0, 0.0 }
  0xd2   : >> { %v628_v53 = vsel %vm556_vm5, %v1942_v39, 0.0  ;;  %vm786_vm6 = vcmp.eq.s32.totalorder %v1789_v35, %v1962_v52  ;;  %v923_v42 = vadd.f32 %v859_v43, %v693_v24  ;;  %vm1002_vm7 = vcmp.eq.s32.totalorder %v1789_v35, %v1965_v49 }
  0xd3   : >> { %v692_v56 = vadd.f32 %v628_v53, %v402_v54  ;;  %v858_v47 = vsel %vm786_vm6, %v1982_v60, 0.0  ;;  %1175 = vmatpush2.msra.mxu0 %v1140_v29  ;;  %v1074_v57 = vsel %vm1002_vm7, %v1987_v14, 0.0  ;;  %vm329_vm8 = vcmp.eq.s32.totalorder %v1786_v34, %v1839_v44 }
  0xd4   : >> { %vm555_vm10 = vcmp.eq.s32.totalorder %v1786_v34, %v1867_v63  ;;  %vm785_vm11 = vcmp.eq.s32.totalorder %v1786_v34, %v1875_v40  ;;  %v1139_v46 = vadd.f32 %v1075_v48, %v923_v42  ;;  %v401_v19 = vsel %vm329_vm8, %v1864_v59, 0.0 }
  0xd5   : >> { %v922_v58 = vadd.f32 %v858_v47, %v692_v56  ;;  %v627_v55 = vsel %vm555_vm10, %v1870_v38, 0.0  ;;  %v857_v37 = vsel %vm785_vm11, %v1890_v50, 0.0  ;;  %vm1001_vm12 = vcmp.eq.s32.totalorder %v1786_v34, %v1878_v41 }
  0xd6   : >> { %v691_v62 = vadd.f32 %v627_v55, %v401_v19  ;;  %vm328_vm13 = vcmp.eq.s32.totalorder %v1786_v34, %v1915_v51  ;;  %1176 = vmatprep.subr.mxu0 %v1139_v46  ;;  %v1073_v43 = vsel %vm1001_vm12, %v1895_v61, 0.0  ;;  %vm554_vm14 = vcmp.eq.s32.totalorder %v1786_v34, %v1948_v15 }
  0xd7   : >> { %v1138_v45 = vadd.f32 %v1074_v57, %v922_v58  ;;  %v400_v24 = vsel %vm328_vm13, %v1918_v0, 0.0  ;;  %v626_v29 = vsel %vm554_vm14, %v1942_v39, 0.0  ;;  %vm784_vm15 = vcmp.eq.s32.totalorder %v1786_v34, %v1962_v52 }
  0xd8   : >> { %v921_v48 = vadd.f32 %v857_v37, %v691_v62  ;;  %vm1000_vm0 = vcmp.eq.s32.totalorder %v1786_v34, %v1965_v49  ;;  %v690_v54 = vadd.f32 %v626_v29, %v400_v24  ;;  %v856_v53 = vsel %vm784_vm15, %v1982_v60, 0.0 }
  0xd9   : >> { %1177 = vmatpush2.msra.mxu0 %v1138_v45  ;;  %v1072_v42 = vsel %vm1000_vm0, %v1987_v14, 0.0  ;;  %vm327_vm1 = vcmp.eq.s32.totalorder %v1783_v33, %v1839_v44  ;;  %vm553_vm9 = vcmp.eq.s32.totalorder %v1783_v33, %v1867_v63  ;;  %vm783_vm2 = vcmp.eq.s32.totalorder %v1783_v33, %v1875_v40 }
  0xda   : >> { %v1137_v56 = vadd.f32 %v1073_v43, %v921_v48  ;;  %v399_v47 = vsel %vm327_vm1, %v1864_v59, 0.0  ;;  %v920_v57 = vadd.f32 %v856_v53, %v690_v54  ;;  %v625_v46 = vsel %vm553_vm9, %v1870_v38, 0.0 }
  0xdb   : >> { %v855_v58 = vsel %vm783_vm2, %v1890_v50, 0.0  ;;  %vm999_vm3 = vcmp.eq.s32.totalorder %v1783_v33, %v1878_v41  ;;  %v689_v19 = vadd.f32 %v625_v46, %v399_v47  ;;  %vm326_vm4 = vcmp.eq.s32.totalorder %v1783_v33, %v1915_v51 }
  0xdc   : >> { %1178 = vmatprep.subr.mxu0 %v1137_v56  ;;  %v1071_v55 = vsel %vm999_vm3, %v1895_v61, 0.0  ;;  %vm552_vm5 = vcmp.eq.s32.totalorder %v1783_v33, %v1948_v15  ;;  %v1136_v62 = vadd.f32 %v1072_v42, %v920_v57  ;;  %v398_v37 = vsel %vm326_vm4, %v1918_v0, 0.0 }
  0xdd   : >> { %v624_v45 = vsel %vm552_vm5, %v1942_v39, 0.0  ;;  %vm782_vm6 = vcmp.eq.s32.totalorder %v1783_v33, %v1962_v52  ;;  %v919_v43 = vadd.f32 %v855_v58, %v689_v19  ;;  %vm998_vm7 = vcmp.eq.s32.totalorder %v1783_v33, %v1965_v49 }
  0xde   : >> { %v688_v24 = vadd.f32 %v624_v45, %v398_v37  ;;  %v854_v48 = vsel %vm782_vm6, %v1982_v60, 0.0  ;;  %1179 = vmatpush2.msra.mxu0 %v1136_v62  ;;  %v1070_v29 = vsel %vm998_vm7, %v1987_v14, 0.0  ;;  %vm325_vm8 = vcmp.eq.s32.totalorder %v1780_v32, %v1839_v44 }
  0xdf   : >> { %vm551_vm10 = vcmp.eq.s32.totalorder %v1780_v32, %v1867_v63  ;;  %vm781_vm11 = vcmp.eq.s32.totalorder %v1780_v32, %v1875_v40  ;;  %v1135_v54 = vadd.f32 %v1071_v55, %v919_v43  ;;  %v397_v42 = vsel %vm325_vm8, %v1864_v59, 0.0 }
  0xe0   : >> { %v918_v53 = vadd.f32 %v854_v48, %v688_v24  ;;  %v623_v56 = vsel %vm551_vm10, %v1870_v38, 0.0  ;;  %v853_v57 = vsel %vm781_vm11, %v1890_v50, 0.0  ;;  %vm997_vm12 = vcmp.eq.s32.totalorder %v1780_v32, %v1878_v41 }
  0xe1   : >> { %v687_v47 = vadd.f32 %v623_v56, %v397_v42  ;;  %vm324_vm13 = vcmp.eq.s32.totalorder %v1780_v32, %v1915_v51  ;;  %1180 = vmatprep.subr.mxu0 %v1135_v54  ;;  %v1069_v58 = vsel %vm997_vm12, %v1895_v61, 0.0  ;;  %vm550_vm14 = vcmp.eq.s32.totalorder %v1780_v32, %v1948_v15 }
  0xe2   : >> { %v1134_v46 = vadd.f32 %v1070_v29, %v918_v53  ;;  %v396_v19 = vsel %vm324_vm13, %v1918_v0, 0.0  ;;  %v622_v62 = vsel %vm550_vm14, %v1942_v39, 0.0  ;;  %vm780_vm15 = vcmp.eq.s32.totalorder %v1780_v32, %v1962_v52 }
  0xe3   : >> { %v917_v55 = vadd.f32 %v853_v57, %v687_v47  ;;  %vm996_vm0 = vcmp.eq.s32.totalorder %v1780_v32, %v1965_v49  ;;  %v686_v37 = vadd.f32 %v622_v62, %v396_v19  ;;  %v852_v45 = vsel %vm780_vm15, %v1982_v60, 0.0 }
  0xe4   : >> { %1181 = vmatpush2.msra.mxu0 %v1134_v46  ;;  %v1068_v43 = vsel %vm996_vm0, %v1987_v14, 0.0  ;;  %vm323_vm1 = vcmp.eq.s32.totalorder %v1777_v31, %v1839_v44  ;;  %vm549_vm9 = vcmp.eq.s32.totalorder %v1777_v31, %v1867_v63  ;;  %vm779_vm2 = vcmp.eq.s32.totalorder %v1777_v31, %v1875_v40 }
  0xe5   : >> { %v1133_v24 = vadd.f32 %v1069_v58, %v917_v55  ;;  %v395_v48 = vsel %vm323_vm1, %v1864_v59, 0.0  ;;  %v916_v29 = vadd.f32 %v852_v45, %v686_v37  ;;  %v621_v54 = vsel %vm549_vm9, %v1870_v38, 0.0 }
  0xe6   : >> { %v851_v53 = vsel %vm779_vm2, %v1890_v50, 0.0  ;;  %vm995_vm3 = vcmp.eq.s32.totalorder %v1777_v31, %v1878_v41  ;;  %v685_v42 = vadd.f32 %v621_v54, %v395_v48  ;;  %vm322_vm4 = vcmp.eq.s32.totalorder %v1777_v31, %v1915_v51 }
  0xe7   : >> { %1182 = vmatprep.subr.mxu0 %v1133_v24  ;;  %v1067_v56 = vsel %vm995_vm3, %v1895_v61, 0.0  ;;  %vm548_vm5 = vcmp.eq.s32.totalorder %v1777_v31, %v1948_v15  ;;  %v1132_v47 = vadd.f32 %v1068_v43, %v916_v29  ;;  %v394_v57 = vsel %vm322_vm4, %v1918_v0, 0.0 }
  0xe8   : >> { %v620_v46 = vsel %vm548_vm5, %v1942_v39, 0.0  ;;  %vm778_vm6 = vcmp.eq.s32.totalorder %v1777_v31, %v1962_v52  ;;  %v915_v58 = vadd.f32 %v851_v53, %v685_v42  ;;  %vm994_vm7 = vcmp.eq.s32.totalorder %v1777_v31, %v1965_v49 }
  0xe9   : >> { %v684_v19 = vadd.f32 %v620_v46, %v394_v57  ;;  %v850_v55 = vsel %vm778_vm6, %v1982_v60, 0.0  ;;  %1183 = vmatpush2.msra.mxu0 %v1132_v47  ;;  %v1066_v62 = vsel %vm994_vm7, %v1987_v14, 0.0  ;;  %vm321_vm8 = vcmp.eq.s32.totalorder %v1774_v30, %v1839_v44 }
  0xea   : >> { %vm547_vm10 = vcmp.eq.s32.totalorder %v1774_v30, %v1867_v63  ;;  %vm777_vm11 = vcmp.eq.s32.totalorder %v1774_v30, %v1875_v40  ;;  %v1131_v37 = vadd.f32 %v1067_v56, %v915_v58  ;;  %v393_v43 = vsel %vm321_vm8, %v1864_v59, 0.0 }
  0xeb   : >> { %v914_v45 = vadd.f32 %v850_v55, %v684_v19  ;;  %v619_v24 = vsel %vm547_vm10, %v1870_v38, 0.0  ;;  %v849_v29 = vsel %vm777_vm11, %v1890_v50, 0.0  ;;  %vm993_vm12 = vcmp.eq.s32.totalorder %v1774_v30, %v1878_v41 }
  0xec   : >> { %v683_v48 = vadd.f32 %v619_v24, %v393_v43  ;;  %vm320_vm13 = vcmp.eq.s32.totalorder %v1774_v30, %v1915_v51  ;;  %1184 = vmatprep.subr.mxu0 %v1131_v37  ;;  %v1065_v53 = vsel %vm993_vm12, %v1895_v61, 0.0  ;;  %vm546_vm14 = vcmp.eq.s32.totalorder %v1774_v30, %v1948_v15 }
  0xed   : >> { %v1130_v54 = vadd.f32 %v1066_v62, %v914_v45  ;;  %v392_v42 = vsel %vm320_vm13, %v1918_v0, 0.0  ;;  %v618_v47 = vsel %vm546_vm14, %v1942_v39, 0.0  ;;  %vm776_vm15 = vcmp.eq.s32.totalorder %v1774_v30, %v1962_v52 }
  0xee   : >> { %v913_v56 = vadd.f32 %v849_v29, %v683_v48  ;;  %vm992_vm0 = vcmp.eq.s32.totalorder %v1774_v30, %v1965_v49  ;;  %v682_v57 = vadd.f32 %v618_v47, %v392_v42  ;;  %v848_v46 = vsel %vm776_vm15, %v1982_v60, 0.0 }
  0xef   : >> { %1185 = vmatpush2.msra.mxu0 %v1130_v54  ;;  %v1064_v58 = vsel %vm992_vm0, %v1987_v14, 0.0  ;;  %vm319_vm1 = vcmp.eq.s32.totalorder %v1770_v28, %v1839_v44  ;;  %vm545_vm9 = vcmp.eq.s32.totalorder %v1770_v28, %v1867_v63  ;;  %vm775_vm2 = vcmp.eq.s32.totalorder %v1770_v28, %v1875_v40 }
  0xf0   : >> { %v1129_v19 = vadd.f32 %v1065_v53, %v913_v56  ;;  %v391_v55 = vsel %vm319_vm1, %v1864_v59, 0.0  ;;  %v912_v62 = vadd.f32 %v848_v46, %v682_v57  ;;  %v617_v37 = vsel %vm545_vm9, %v1870_v38, 0.0 }
  0xf1   : >> { %v847_v45 = vsel %vm775_vm2, %v1890_v50, 0.0  ;;  %vm991_vm3 = vcmp.eq.s32.totalorder %v1770_v28, %v1878_v41  ;;  %v681_v43 = vadd.f32 %v617_v37, %v391_v55  ;;  %vm318_vm4 = vcmp.eq.s32.totalorder %v1770_v28, %v1915_v51 }
  0xf2   : >> { %1186 = vmatprep.subr.mxu0 %v1129_v19  ;;  %v1063_v24 = vsel %vm991_vm3, %v1895_v61, 0.0  ;;  %vm544_vm5 = vcmp.eq.s32.totalorder %v1770_v28, %v1948_v15  ;;  %v1128_v48 = vadd.f32 %v1064_v58, %v912_v62  ;;  %v390_v29 = vsel %vm318_vm4, %v1918_v0, 0.0 }
  0xf3   : >> { %v616_v54 = vsel %vm544_vm5, %v1942_v39, 0.0  ;;  %vm774_vm6 = vcmp.eq.s32.totalorder %v1770_v28, %v1962_v52  ;;  %v911_v53 = vadd.f32 %v847_v45, %v681_v43  ;;  %vm990_vm7 = vcmp.eq.s32.totalorder %v1770_v28, %v1965_v49 }
  0xf4   : >> { %v680_v42 = vadd.f32 %v616_v54, %v390_v29  ;;  %v846_v56 = vsel %vm774_vm6, %v1982_v60, 0.0  ;;  %1187 = vmatpush2.msra.mxu0 %v1128_v48  ;;  %v1062_v47 = vsel %vm990_vm7, %v1987_v14, 0.0  ;;  %vm317_vm8 = vcmp.eq.s32.totalorder %v1767_v27, %v1839_v44 }
  0xf5   : >> { %vm543_vm10 = vcmp.eq.s32.totalorder %v1767_v27, %v1867_v63  ;;  %vm773_vm11 = vcmp.eq.s32.totalorder %v1767_v27, %v1875_v40  ;;  %v1127_v57 = vadd.f32 %v1063_v24, %v911_v53  ;;  %v389_v58 = vsel %vm317_vm8, %v1864_v59, 0.0 }
  0xf6   : >> { %v910_v46 = vadd.f32 %v846_v56, %v680_v42  ;;  %v615_v19 = vsel %vm543_vm10, %v1870_v38, 0.0  ;;  %v845_v62 = vsel %vm773_vm11, %v1890_v50, 0.0  ;;  %vm989_vm12 = vcmp.eq.s32.totalorder %v1767_v27, %v1878_v41 }
  0xf7   : >> { %v679_v55 = vadd.f32 %v615_v19, %v389_v58  ;;  %vm316_vm13 = vcmp.eq.s32.totalorder %v1767_v27, %v1915_v51  ;;  %1188 = vmatprep.subr.mxu0 %v1127_v57  ;;  %v1061_v45 = vsel %vm989_vm12, %v1895_v61, 0.0  ;;  %vm542_vm14 = vcmp.eq.s32.totalorder %v1767_v27, %v1948_v15 }
  0xf8   : >> { %v1126_v37 = vadd.f32 %v1062_v47, %v910_v46  ;;  %v388_v43 = vsel %vm316_vm13, %v1918_v0, 0.0  ;;  %v614_v48 = vsel %vm542_vm14, %v1942_v39, 0.0  ;;  %vm772_vm15 = vcmp.eq.s32.totalorder %v1767_v27, %v1962_v52 }
  0xf9   : >> { %v909_v24 = vadd.f32 %v845_v62, %v679_v55  ;;  %vm988_vm0 = vcmp.eq.s32.totalorder %v1767_v27, %v1965_v49  ;;  %v678_v29 = vadd.f32 %v614_v48, %v388_v43  ;;  %v844_v54 = vsel %vm772_vm15, %v1982_v60, 0.0 }
  0xfa   : >> { %1189 = vmatpush2.msra.mxu0 %v1126_v37  ;;  %v1060_v53 = vsel %vm988_vm0, %v1987_v14, 0.0  ;;  %vm315_vm1 = vcmp.eq.s32.totalorder %v1764_v26, %v1839_v44  ;;  %vm541_vm9 = vcmp.eq.s32.totalorder %v1764_v26, %v1867_v63  ;;  %vm771_vm2 = vcmp.eq.s32.totalorder %v1764_v26, %v1875_v40 }
  0xfb   : >> { %v1125_v42 = vadd.f32 %v1061_v45, %v909_v24  ;;  %v387_v56 = vsel %vm315_vm1, %v1864_v59, 0.0  ;;  %v908_v47 = vadd.f32 %v844_v54, %v678_v29  ;;  %v613_v57 = vsel %vm541_vm9, %v1870_v38, 0.0 }
  0xfc   : >> { %v843_v46 = vsel %vm771_vm2, %v1890_v50, 0.0  ;;  %vm987_vm3 = vcmp.eq.s32.totalorder %v1764_v26, %v1878_v41  ;;  %v677_v58 = vadd.f32 %v613_v57, %v387_v56  ;;  %vm314_vm4 = vcmp.eq.s32.totalorder %v1764_v26, %v1915_v51 }
  0xfd   : >> { %1190 = vmatprep.subr.mxu0 %v1125_v42  ;;  %v1059_v19 = vsel %vm987_vm3, %v1895_v61, 0.0  ;;  %vm540_vm5 = vcmp.eq.s32.totalorder %v1764_v26, %v1948_v15  ;;  %v1124_v55 = vadd.f32 %v1060_v53, %v908_v47  ;;  %v386_v62 = vsel %vm314_vm4, %v1918_v0, 0.0 }
  0xfe   : >> { %v612_v37 = vsel %vm540_vm5, %v1942_v39, 0.0  ;;  %vm770_vm6 = vcmp.eq.s32.totalorder %v1764_v26, %v1962_v52  ;;  %v907_v45 = vadd.f32 %v843_v46, %v677_v58  ;;  %vm986_vm7 = vcmp.eq.s32.totalorder %v1764_v26, %v1965_v49 }
  0xff   : >> { %v676_v43 = vadd.f32 %v612_v37, %v386_v62  ;;  %v842_v24 = vsel %vm770_vm6, %v1982_v60, 0.0  ;;  %1191 = vmatpush2.msra.mxu0 %v1124_v55  ;;  %v1058_v48 = vsel %vm986_vm7, %v1987_v14, 0.0  ;;  %vm313_vm8 = vcmp.eq.s32.totalorder %v1761_v25, %v1839_v44 }
 0x100   : >> { %vm539_vm10 = vcmp.eq.s32.totalorder %v1761_v25, %v1867_v63  ;;  %vm769_vm11 = vcmp.eq.s32.totalorder %v1761_v25, %v1875_v40  ;;  %v1123_v29 = vadd.f32 %v1059_v19, %v907_v45  ;;  %v385_v53 = vsel %vm313_vm8, %v1864_v59, 0.0 }
 0x101   : >> { %v906_v54 = vadd.f32 %v842_v24, %v676_v43  ;;  %v611_v42 = vsel %vm539_vm10, %v1870_v38, 0.0  ;;  %v841_v47 = vsel %vm769_vm11, %v1890_v50, 0.0  ;;  %vm985_vm12 = vcmp.eq.s32.totalorder %v1761_v25, %v1878_v41 }
 0x102   : >> { %v675_v56 = vadd.f32 %v611_v42, %v385_v53  ;;  %vm312_vm13 = vcmp.eq.s32.totalorder %v1761_v25, %v1915_v51  ;;  %1192 = vmatprep.subr.mxu0 %v1123_v29  ;;  %v1057_v46 = vsel %vm985_vm12, %v1895_v61, 0.0  ;;  %vm538_vm14 = vcmp.eq.s32.totalorder %v1761_v25, %v1948_v15 }
 0x103   : >> { %v1122_v57 = vadd.f32 %v1058_v48, %v906_v54  ;;  %v384_v58 = vsel %vm312_vm13, %v1918_v0, 0.0  ;;  %v610_v55 = vsel %vm538_vm14, %v1942_v39, 0.0  ;;  %vm768_vm15 = vcmp.eq.s32.totalorder %v1761_v25, %v1962_v52 }
 0x104   : >> { %v905_v19 = vadd.f32 %v841_v47, %v675_v56  ;;  %vm984_vm0 = vcmp.eq.s32.totalorder %v1761_v25, %v1965_v49  ;;  %v674_v62 = vadd.f32 %v610_v55, %v384_v58  ;;  %v840_v37 = vsel %vm768_vm15, %v1982_v60, 0.0 }
 0x105   : >> { %1193 = vmatpush2.msra.mxu0 %v1122_v57  ;;  %v1056_v45 = vsel %vm984_vm0, %v1987_v14, 0.0  ;;  %vm311_vm1 = vcmp.eq.s32.totalorder %v1757_v23, %v1839_v44  ;;  %vm537_vm9 = vcmp.eq.s32.totalorder %v1757_v23, %v1867_v63  ;;  %vm767_vm2 = vcmp.eq.s32.totalorder %v1757_v23, %v1875_v40 }
 0x106   : >> { %v1121_v43 = vadd.f32 %v1057_v46, %v905_v19  ;;  %v383_v24 = vsel %vm311_vm1, %v1864_v59, 0.0  ;;  %v904_v48 = vadd.f32 %v840_v37, %v674_v62  ;;  %v609_v29 = vsel %vm537_vm9, %v1870_v38, 0.0 }
 0x107   : >> { %v839_v54 = vsel %vm767_vm2, %v1890_v50, 0.0  ;;  %vm983_vm3 = vcmp.eq.s32.totalorder %v1757_v23, %v1878_v41  ;;  %v673_v53 = vadd.f32 %v609_v29, %v383_v24  ;;  %vm310_vm4 = vcmp.eq.s32.totalorder %v1757_v23, %v1915_v51 }
 0x108   : >> { %1194 = vmatprep.subr.mxu0 %v1121_v43  ;;  %v1055_v42 = vsel %vm983_vm3, %v1895_v61, 0.0  ;;  %vm536_vm5 = vcmp.eq.s32.totalorder %v1757_v23, %v1948_v15  ;;  %v1120_v56 = vadd.f32 %v1056_v45, %v904_v48  ;;  %v382_v47 = vsel %vm310_vm4, %v1918_v0, 0.0 }
 0x109   : >> { %v608_v57 = vsel %vm536_vm5, %v1942_v39, 0.0  ;;  %vm766_vm6 = vcmp.eq.s32.totalorder %v1757_v23, %v1962_v52  ;;  %v903_v46 = vadd.f32 %v839_v54, %v673_v53  ;;  %vm982_vm7 = vcmp.eq.s32.totalorder %v1757_v23, %v1965_v49 }
 0x10a   : >> { %v672_v58 = vadd.f32 %v608_v57, %v382_v47  ;;  %v838_v19 = vsel %vm766_vm6, %v1982_v60, 0.0  ;;  %1195 = vmatpush2.msra.mxu0 %v1120_v56  ;;  %v1054_v55 = vsel %vm982_vm7, %v1987_v14, 0.0  ;;  %vm309_vm8 = vcmp.eq.s32.totalorder %v1754_v22, %v1839_v44 }
 0x10b   : >> { %vm535_vm10 = vcmp.eq.s32.totalorder %v1754_v22, %v1867_v63  ;;  %vm765_vm11 = vcmp.eq.s32.totalorder %v1754_v22, %v1875_v40  ;;  %v1119_v62 = vadd.f32 %v1055_v42, %v903_v46  ;;  %v381_v45 = vsel %vm309_vm8, %v1864_v59, 0.0 }
 0x10c   : >> { %v902_v37 = vadd.f32 %v838_v19, %v672_v58  ;;  %v607_v43 = vsel %vm535_vm10, %v1870_v38, 0.0  ;;  %v837_v48 = vsel %vm765_vm11, %v1890_v50, 0.0  ;;  %vm981_vm12 = vcmp.eq.s32.totalorder %v1754_v22, %v1878_v41 }
 0x10d   : >> { %v671_v24 = vadd.f32 %v607_v43, %v381_v45  ;;  %vm308_vm13 = vcmp.eq.s32.totalorder %v1754_v22, %v1915_v51  ;;  %1196 = vmatprep.subr.mxu0 %v1119_v62  ;;  %v1053_v54 = vsel %vm981_vm12, %v1895_v61, 0.0  ;;  %vm534_vm14 = vcmp.eq.s32.totalorder %v1754_v22, %v1948_v15 }
 0x10e   : >> { %v1118_v29 = vadd.f32 %v1054_v55, %v902_v37  ;;  %v380_v53 = vsel %vm308_vm13, %v1918_v0, 0.0  ;;  %v606_v56 = vsel %vm534_vm14, %v1942_v39, 0.0  ;;  %vm764_vm15 = vcmp.eq.s32.totalorder %v1754_v22, %v1962_v52 }
 0x10f   : >> { %v901_v42 = vadd.f32 %v837_v48, %v671_v24  ;;  %vm980_vm0 = vcmp.eq.s32.totalorder %v1754_v22, %v1965_v49  ;;  %v670_v47 = vadd.f32 %v606_v56, %v380_v53  ;;  %v836_v57 = vsel %vm764_vm15, %v1982_v60, 0.0 }
 0x110   : >> { %1197 = vmatpush2.msra.mxu0 %v1118_v29  ;;  %v1052_v46 = vsel %vm980_vm0, %v1987_v14, 0.0  ;;  %vm307_vm1 = vcmp.eq.s32.totalorder %v1751_v21, %v1839_v44  ;;  %vm533_vm9 = vcmp.eq.s32.totalorder %v1751_v21, %v1867_v63  ;;  %vm763_vm2 = vcmp.eq.s32.totalorder %v1751_v21, %v1875_v40 }
 0x111   : >> { %v1117_v58 = vadd.f32 %v1053_v54, %v901_v42  ;;  %v379_v19 = vsel %vm307_vm1, %v1864_v59, 0.0  ;;  %v900_v55 = vadd.f32 %v836_v57, %v670_v47  ;;  %v605_v62 = vsel %vm533_vm9, %v1870_v38, 0.0 }
 0x112   : >> { %v835_v37 = vsel %vm763_vm2, %v1890_v50, 0.0  ;;  %vm979_vm3 = vcmp.eq.s32.totalorder %v1751_v21, %v1878_v41  ;;  %v669_v45 = vadd.f32 %v605_v62, %v379_v19  ;;  %vm306_vm4 = vcmp.eq.s32.totalorder %v1751_v21, %v1915_v51 }
 0x113   : >> { %1198 = vmatprep.subr.mxu0 %v1117_v58  ;;  %v1051_v43 = vsel %vm979_vm3, %v1895_v61, 0.0  ;;  %vm532_vm5 = vcmp.eq.s32.totalorder %v1751_v21, %v1948_v15  ;;  %v1116_v24 = vadd.f32 %v1052_v46, %v900_v55  ;;  %v378_v48 = vsel %vm306_vm4, %v1918_v0, 0.0 }
 0x114   : >> { %v604_v29 = vsel %vm532_vm5, %v1942_v39, 0.0  ;;  %vm762_vm6 = vcmp.eq.s32.totalorder %v1751_v21, %v1962_v52  ;;  %v899_v54 = vadd.f32 %v835_v37, %v669_v45  ;;  %vm978_vm7 = vcmp.eq.s32.totalorder %v1751_v21, %v1965_v49 }
 0x115   : >> { %v668_v53 = vadd.f32 %v604_v29, %v378_v48  ;;  %v834_v42 = vsel %vm762_vm6, %v1982_v60, 0.0  ;;  %1199 = vmatpush2.msra.mxu0 %v1116_v24  ;;  %v1050_v56 = vsel %vm978_vm7, %v1987_v14, 0.0  ;;  %vm305_vm8 = vcmp.eq.s32.totalorder %v1748_v20, %v1839_v44 }
 0x116   : >> { %vm531_vm10 = vcmp.eq.s32.totalorder %v1748_v20, %v1867_v63  ;;  %vm761_vm11 = vcmp.eq.s32.totalorder %v1748_v20, %v1875_v40  ;;  %v1115_v47 = vadd.f32 %v1051_v43, %v899_v54  ;;  %v377_v46 = vsel %vm305_vm8, %v1864_v59, 0.0 }
 0x117   : >> { %v898_v57 = vadd.f32 %v834_v42, %v668_v53  ;;  %v603_v58 = vsel %vm531_vm10, %v1870_v38, 0.0  ;;  %v833_v55 = vsel %vm761_vm11, %v1890_v50, 0.0  ;;  %vm977_vm12 = vcmp.eq.s32.totalorder %v1748_v20, %v1878_v41  ;;  %v2808_v53 = vld [vmem:[#allocation13_spill] sm:$0xff] }
 0x118   : >> { %v667_v19 = vadd.f32 %v603_v58, %v377_v46  ;;  %vm304_vm13 = vcmp.eq.s32.totalorder %v1748_v20, %v1915_v51  ;;  %1200 = vmatprep.subr.mxu0 %v1115_v47  ;;  %v1049_v37 = vsel %vm977_vm12, %v1895_v61, 0.0  ;;  %vm530_vm14 = vcmp.eq.s32.totalorder %v1748_v20, %v1948_v15 }
 0x119   : >> { %v1114_v62 = vadd.f32 %v1050_v56, %v898_v57  ;;  %v376_v45 = vsel %vm304_vm13, %v1918_v0, 0.0  ;;  %v602_v24 = vsel %vm530_vm14, %v1942_v39, 0.0  ;;  %vm760_vm15 = vcmp.eq.s32.totalorder %v1748_v20, %v1962_v52 }
 0x11a   : >> { %v897_v43 = vadd.f32 %v833_v55, %v667_v19  ;;  %vm976_vm0 = vcmp.eq.s32.totalorder %v1748_v20, %v1965_v49  ;;  %v666_v48 = vadd.f32 %v602_v24, %v376_v45  ;;  %v832_v29 = vsel %vm760_vm15, %v1982_v60, 0.0 }
 0x11b   : >> { %1201 = vmatpush2.msra.mxu0 %v1114_v62  ;;  %v1048_v54 = vsel %vm976_vm0, %v1987_v14, 0.0  ;;  %vm303_vm1 = vcmp.eq.s32.totalorder %v2808_v53, %v1839_v44  ;;  %vm529_vm9 = vcmp.eq.s32.totalorder %v2808_v53, %v1867_v63  ;;  %vm759_vm2 = vcmp.eq.s32.totalorder %v2808_v53, %v1875_v40  ;;  %v1406_v62 = vld [vmem:[%s1796_s15 + $0x8] sm:$0xff] }
 0x11c   : >> { %v1113_v42 = vadd.f32 %v1049_v37, %v897_v43  ;;  %v375_v56 = vsel %vm303_vm1, %v1864_v59, 0.0  ;;  %v896_v47 = vadd.f32 %v832_v29, %v666_v48  ;;  %v601_v57 = vsel %vm529_vm9, %v1870_v38, 0.0 }
 0x11d   : >> { %v831_v46 = vsel %vm759_vm2, %v1890_v50, 0.0  ;;  %vm975_vm3 = vcmp.eq.s32.totalorder %v2808_v53, %v1878_v41  ;;  %v665_v58 = vadd.f32 %v601_v57, %v375_v56  ;;  %vm302_vm4 = vcmp.eq.s32.totalorder %v2808_v53, %v1915_v51 }
 0x11e   : >> { %1202 = vmatprep.subr.mxu0 %v1113_v42  ;;  %v1047_v44 = vsel %vm975_vm3, %v1895_v61, 0.0  ;;  %vm528_vm5 = vcmp.eq.s32.totalorder %v2808_v53, %v1948_v15  ;;  %v1112_v59 = vadd.f32 %v1048_v54, %v896_v47  ;;  %v374_v63 = vsel %vm302_vm4, %v1918_v0, 0.0 }
 0x11f   : >> { %v600_v38 = vsel %vm528_vm5, %v1942_v39, 0.0  ;;  %vm758_vm6 = vcmp.eq.s32.totalorder %v2808_v53, %v1962_v52  ;;  %v895_v40 = vadd.f32 %v831_v46, %v665_v58  ;;  %vm974_vm7 = vcmp.eq.s32.totalorder %v2808_v53, %v1965_v49  ;;  %v1405_v39 = vld [vmem:[%s1796_s15] sm:$0xff] }
 0x120   : >> { %v664_v41 = vadd.f32 %v600_v38, %v374_v63  ;;  %v830_v50 = vsel %vm758_vm6, %v1982_v60, 0.0  ;;  %1203 = vmatpush2.msra.mxu0 %v1112_v59  ;;  %v1046_v15 = vsel %vm974_vm7, %v1987_v14, 0.0 }
 0x121   : >> { %v1111_v61 = vadd.f32 %v1047_v44, %v895_v40 }
 0x122   : >> { %v894_v0 = vadd.f32 %v830_v50, %v664_v41 }
 0x123   : >> { %1204 = vmatprep.subr.mxu0 %v1111_v61 }
 0x124   : >> { %v1110_v51 = vadd.f32 %v1046_v15, %v894_v0 }
 0x126   : >> { %1205 = vmatpush2.msra.mxu0 %v1110_v51 }
 0x127   : >> { %1207 = vmatmul.mubr.f32.vlgmr.msra.gmra.mxu0 %v1405_v39 }
 0x1e7   : >> { %v1208_v52 = vpop.f32.mrf.mxu0 }
 0x1e8   : >> { %v1213_v19 = vadd.f32 %v1405_v39, %v1208_v52  ;;  %218 = sbr.rel (!%p216_p9) target bundleno = 85 (0x55), region = 84 }
 0x1e9   : >> { %v1210_v55 = vpop.f32.mrf.mxu0 }
 0x1ea   : >> { %1215 = vst [vmem:[%s1796_s15] sm:$0xff] %v1213_v19  ;;  %v1214_v60 = vadd.f32 %v1406_v62, %v1210_v55 }
 0x1ec   : >> { %1216 = vst [vmem:[%s1796_s15 + $0x8] sm:$0xff] %v1214_v60 }
 0x1ed   : > { %1474 = shalt.err (!%p1471_p12)
}
 0x1ee   : > { %s1475_s13 = scalar_lea.hbm %s1230_s19, 256  ;;  %s1479_s4 = scalar_lea.hbm %s2767_s2, 512 }
 0x1ef   : > { %p1476_p5 = scmp.ne.s32.totalorder %s1230_s19, %s1475_s13  ;;  %p1480_p6 = scmp.lt.s32.totalorder %s1230_s19, %s2767_s2 }
 0x1f0   : > { %p1481_p8 = scmp.lt.s32.totalorder %s1479_s4, %s1475_s13 }
 0x1f1   : > { %p1477_p7 = pnand %p1476_p5, %p2809_p13 }
 0x1f2   : > { %p1482_p9 = por %p1481_p8, %p1480_p6 }
 0x1f3   : > { %p1478_p4 = pneg %p1477_p7 }
 0x1f5   : > { %p1483_p11 = pnand %p1482_p9, %p1478_p4 }
 0x1f7   : > { %1486 = shalt.err (!%p1483_p11)
}
 0x1f8   : > { %1345 = dma.vmem_to_hbm [thread:$0]  (%p2809_p13), %s1233_s22, 256, %s1230_s19, %s1218_s23  }
 0x1f9 PF: > { %s1244_s8 = sand.u32 1, %s1521_s9   ;;  %p2810_p10 = scmp.ne.s32.totalorder %s2776_s16, 0 }
 0x1fa   : > { %p2811_p1 = scmp.ge.s32.totalorder %s1533_s12, 2  ;;  %s1245_s21 = scalar_lea.sflag [#allocation4], %s1244_s8 }
 0x1fc   : > { %p1356_p2 = pnand %p2811_p1, %p2810_p10 }
 0x1fe   : > { %p1357_p0 = pneg %p1356_p2 }
 0x200   : > { %1516 = dma.done.wait (%p1357_p0), %s1245_s21, 256  }
 0x201   : > { %1518 = vsyncadd (%p1357_p0), %s1245_s21, 4294967040  ;;  %p16_p3 = scmp.ge.s32.totalorder %s1606_s20, 4   ;;  %s2812_s9 = smov %s1525_s10 }
 0x202   : > { %s2813_s10 = smov %s1529_s11  ;;  %s2814_s11 = smov %s1633_s28 }
 0x203   : > { %s2815_s12 = smov %s1606_s20  ;;  %18 = sbr.rel (!%p16_p3) target bundleno = 6 (0x6), region = 95 }
 0x208   :  { %1250 = vsyncpa [#allocation3], 1 }
 0x209   :  { %1252 = vsyncpa [#allocation3 + $0x1], 1 }
 0x20a   :  { %1253 = vsyncpa [#allocation6], 1 }
 0x20b   :  { %1254 = vsyncpa [#allocation4], 1 }
 0x20c   :  { %1256 = vsyncpa [#allocation4 + $0x1], 1 }

</bundles_post_ra>
